<compile_context>
chip_gen: v5e
topology: v5e:2x2
jax: 0.10.0
libtpu: 0.0.40
codegen_flags: <defaults>
</compile_context>

<pallas_src>
import math

import jax
import jax.numpy as jnp
from jax.experimental import pallas as pl
from jax.experimental.pallas import tpu as pltpu  # noqa: F401  (kept per template)

# ---------------- small DistilBERT-shaped config ----------------
VOCAB = 50
MAX_POS = 16
HIDDEN = 32
N_HEADS = 4
HEAD_DIM = HIDDEN // N_HEADS
FFN = 64
N_LAYERS = 2
LN_EPS = 1e-12
N_HVEC = 8  # rows in the packed per-layer H-wide vector slab (6 used + 2 pad)


# ---------------- in-kernel math helpers ----------------
def _layernorm(x, g, b, eps=LN_EPS):
    mu = jnp.mean(x, axis=-1, keepdims=True)
    var = jnp.mean(jnp.square(x - mu), axis=-1, keepdims=True)
    return (x - mu) * jax.lax.rsqrt(var + eps) * g + b


def _gelu(x):
    # tanh-approx GELU
    return 0.5 * x * (1.0 + jnp.tanh(0.7978845608028654 * (x + 0.044715 * x * x * x)))


# ---------------- single fused Pallas kernel (whole batch, one invocation) ----------------
def _make_kernel(B, S):
    BS = B * S

    def kernel(ids_ref, wemb_ref, pemb_ref, embln_ref, wattn_ref, battn_ref,
               wff1_ref, bff1_ref, wff2_ref, hvec_ref, clsw_ref, clsb_ref, o_ref):
        # ---- embeddings: one-hot MXU gather + position add + LayerNorm ----
        ids = ids_ref[...]                                             # (BS, 1) int32
        vocab_iota = jax.lax.broadcasted_iota(jnp.int32, (BS, VOCAB), 1)
        onehot = (ids == vocab_iota).astype(jnp.float32)               # (BS, VOCAB)
        x = jnp.dot(onehot, wemb_ref[...],
                    preferred_element_type=jnp.float32)                # (BS, H)
        pe = pemb_ref[0:S, :]                                          # (S, H)
        x = x + jnp.concatenate([pe] * B, axis=0)                      # (BS, H)
        embln = embln_ref[...]                                         # (2, H)
        x = _layernorm(x, embln[0:1, :], embln[1:2, :])

        # ---- transformer layers (statically unrolled, weights VMEM-resident) ----
        for l in range(N_LAYERS):
            w_attn = wattn_ref[l]                                      # (H, 4H) [wq*s|wk|wv|wo]
            w_qkv = w_attn[:, : 3 * HIDDEN]                            # (H, 3H)
            w_o = w_attn[:, 3 * HIDDEN:]                               # (H, H)
            hv = hvec_ref[l]                                           # (N_HVEC, H)
            bo, ln1_g, ln1_b = hv[0:1, :], hv[1:2, :], hv[2:3, :]
            b2, ln2_g, ln2_b = hv[3:4, :], hv[4:5, :], hv[5:6, :]

            # fused QKV projection for the whole batch; 1/sqrt(dh) folded into wq/bq
            qkv = jnp.dot(x, w_qkv, preferred_element_type=jnp.float32) + battn_ref[l]
            qkv3 = qkv.reshape(B, S, 3 * HIDDEN)                       # (B, S, 3H)

            # multi-head self-attention (no mask: reference passes none).
            # Each head is batched over B with one 3-D einsum per QK^T / PV;
            # contexts are concatenated and go through ONE output projection.
            ctx_heads = []
            for h in range(N_HEADS):                                   # statically unrolled
                lo = h * HEAD_DIM
                hi = lo + HEAD_DIM
                qh = qkv3[:, :, lo:hi]                                 # (B, S, dh), pre-scaled
                kh = qkv3[:, :, HIDDEN + lo:HIDDEN + hi]
                vh = qkv3[:, :, 2 * HIDDEN + lo:2 * HIDDEN + hi]
                s = jnp.einsum('bqd,bkd->bqk', qh, kh,
                               preferred_element_type=jnp.float32)     # (B, S, S)
                s = s - jnp.max(s, axis=-1, keepdims=True)
                p = jnp.exp(s)
                p = p * pl.reciprocal(jnp.sum(p, axis=-1, keepdims=True), approx=True)
                ctx_heads.append(jnp.einsum('bqk,bkd->bqd', p, vh,
                                            preferred_element_type=jnp.float32))
            ctx = jnp.concatenate(ctx_heads, axis=-1).reshape(BS, HIDDEN)   # (BS, H)
            attn = jnp.dot(ctx, w_o, preferred_element_type=jnp.float32) + bo

            h1 = _layernorm(x + attn, ln1_g, ln1_b)                    # sa_layer_norm
            ff = _gelu(jnp.dot(h1, wff1_ref[l],
                               preferred_element_type=jnp.float32) + bff1_ref[l])
            ff = jnp.dot(ff, wff2_ref[l], preferred_element_type=jnp.float32) + b2
            x = _layernorm(h1 + ff, ln2_g, ln2_b)                      # output_layer_norm

        # ---- CLS pool + classifier linear + sigmoid (lane-dense (1, B) store) ----
        pooled = jnp.concatenate([x[b * S:b * S + 1, :] for b in range(B)], axis=0)  # (B, H)
        logit = jax.lax.dot_general(
            clsw_ref[...], pooled, (((1,), (1,)), ((), ())),
            preferred_element_type=jnp.float32) + clsb_ref[...]        # (1, B)
        o_ref[...] = jax.nn.sigmoid(logit)

    return kernel


def distilbert_classifier_forward(packed, input_ids):
    """Full DistilBERTClassifier.forward: input_ids (B, S) -> sigmoid probs (B, 1)."""
    B, S = input_ids.shape
    ids2d = input_ids.reshape(B * S, 1).astype(jnp.int32)
    out = pl.pallas_call(
        _make_kernel(B, S),
        out_shape=jax.ShapeDtypeStruct((1, B), jnp.float32),
        # No grid: a single invocation; every input is a full-array VMEM block,
        # DMA'd exactly once (no double-buffering needed).
    )(ids2d, packed["word_emb"], packed["pos_emb"], packed["emb_ln"],
      packed["w_attn"], packed["b_attn"], packed["w_ffn1"], packed["b_ffn1"],
      packed["w_ffn2"], packed["hvecs"], packed["cls_w"], packed["cls_b"])
    return out.reshape(B, 1)


# ---------------- parameters (deterministic synthetic init) ----------------
def init_params(key):
    keys = iter(jax.random.split(key, 8 + 8 * N_LAYERS))

    def nrm(shape, scale=0.02):
        return scale * jax.random.normal(next(keys), shape, dtype=jnp.float32)

    params = {
        "word_emb": nrm((VOCAB, HIDDEN)),
        "pos_emb": nrm((MAX_POS, HIDDEN)),
        "emb_ln_g": jnp.ones((1, HIDDEN), jnp.float32),
        "emb_ln_b": jnp.zeros((1, HIDDEN), jnp.float32),
        "out_w": nrm((1, HIDDEN)),              # nn.Linear(H, 1) weight, row form
        "out_b": jnp.zeros((1, 1), jnp.float32),
        "layers": [],
    }
    for _ in range(N_LAYERS):
        params["layers"].append({
            "wq": nrm((HIDDEN, HIDDEN)), "bq": jnp.zeros((1, HIDDEN), jnp.float32),
            "wk": nrm((HIDDEN, HIDDEN)), "bk": jnp.zeros((1, HIDDEN), jnp.float32),
            "wv": nrm((HIDDEN, HIDDEN)), "bv": jnp.zeros((1, HIDDEN), jnp.float32),
            "wo": nrm((HIDDEN, HIDDEN)), "bo": jnp.zeros((1, HIDDEN), jnp.float32),
            "ln1_g": jnp.ones((1, HIDDEN), jnp.float32),
            "ln1_b": jnp.zeros((1, HIDDEN), jnp.float32),
            "w1": nrm((HIDDEN, FFN)), "b1": jnp.zeros((1, FFN), jnp.float32),
            "w2": nrm((FFN, HIDDEN)), "b2": jnp.zeros((1, HIDDEN), jnp.float32),
            "ln2_g": jnp.ones((1, HIDDEN), jnp.float32),
            "ln2_b": jnp.zeros((1, HIDDEN), jnp.float32),
        })
    return params


def pack_params(p):
    """One-time parameter prep: fold attention scale, stack layers, pack vectors.

    Called ONCE at init (hoisted out of the forward path per review)."""
    scale = 1.0 / math.sqrt(HEAD_DIM)
    w_attn, b_attn, w1s, b1s, w2s, hvs = [], [], [], [], [], []
    pad = jnp.zeros((N_HVEC - 6, HIDDEN), jnp.float32)
    for lp in p["layers"]:
        w_attn.append(jnp.concatenate(
            [lp["wq"] * scale, lp["wk"], lp["wv"], lp["wo"]], axis=1))   # (H, 4H)
        b_attn.append(jnp.concatenate(
            [lp["bq"] * scale, lp["bk"], lp["bv"]], axis=1))             # (1, 3H)
        w1s.append(lp["w1"]); b1s.append(lp["b1"]); w2s.append(lp["w2"])
        hvs.append(jnp.concatenate(
            [lp["bo"], lp["ln1_g"], lp["ln1_b"],
             lp["b2"], lp["ln2_g"], lp["ln2_b"], pad], axis=0))          # (N_HVEC, H)
    return {
        "word_emb": p["word_emb"],     # (VOCAB, H)
        "pos_emb": p["pos_emb"],       # (MAX_POS, H)
        "emb_ln": jnp.concatenate([p["emb_ln_g"], p["emb_ln_b"]], axis=0),  # (2, H)
        "w_attn": jnp.stack(w_attn),   # (L, H, 4H)
        "b_attn": jnp.stack(b_attn),   # (L, 1, 3H)
        "w_ffn1": jnp.stack(w1s),      # (L, H, FFN)
        "b_ffn1": jnp.stack(b1s),      # (L, 1, FFN)
        "w_ffn2": jnp.stack(w2s),      # (L, FFN, H)
        "hvecs": jnp.stack(hvs),       # (L, N_HVEC, H)
        "cls_w": p["out_w"],           # (1, H)
        "cls_b": p["out_b"],           # (1, 1)
    }


if __name__ == "__main__":
    key = jax.random.PRNGKey(0)
    pkey, dkey = jax.random.split(key)
    params = init_params(pkey)
    packed = pack_params(params)        # one-time prep, outside the forward path

    B, S = 2, 8
    input_ids = jax.random.randint(dkey, (B, S), 0, VOCAB, dtype=jnp.int32)

    fwd = jax.jit(distilbert_classifier_forward)
    out = jax.block_until_ready(fwd(packed, input_ids))

    assert out.shape == (B, 1) and out.dtype == jnp.float32
    assert bool(jnp.all((out >= 0.0) & (out <= 1.0)))
    assert bool(jnp.all(jnp.isfinite(out)))
    print("KERNEL_OK")
</pallas_src>

<mosaic_0001>
module attributes {stable_mosaic.version = 11 : i64} {
  func.func @kernel(%arg0: memref<16x1xi32, #tpu.memory_space<vmem>>, %arg1: memref<50x32xf32, #tpu.memory_space<vmem>>, %arg2: memref<16x32xf32, #tpu.memory_space<vmem>>, %arg3: memref<2x32xf32, #tpu.memory_space<vmem>>, %arg4: memref<2x32x128xf32, #tpu.memory_space<vmem>>, %arg5: memref<2x1x96xf32, #tpu.memory_space<vmem>>, %arg6: memref<2x32x64xf32, #tpu.memory_space<vmem>>, %arg7: memref<2x1x64xf32, #tpu.memory_space<vmem>>, %arg8: memref<2x64x32xf32, #tpu.memory_space<vmem>>, %arg9: memref<2x8x32xf32, #tpu.memory_space<vmem>>, %arg10: memref<1x32xf32, #tpu.memory_space<vmem>>, %arg11: memref<1x1xf32, #tpu.memory_space<vmem>>, %arg12: memref<1x2xf32, #tpu.memory_space<vmem>>) attributes {dimension_semantics = [], scalar_prefetch = 0 : i64, scratch_operands = 0 : i64, tpu.core_type = #tpu.core_type<tc>} {
    %c0 = arith.constant 0 : index
    %c0_0 = arith.constant 0 : index
    %0 = vector.load %arg0[%c0, %c0_0] : memref<16x1xi32, #tpu.memory_space<vmem>>, vector<16x1xi32>
    %1 = tpu.iota {dimensions = array<i32: 1>} : vector<16x50xi32>
    %2 = vector.broadcast %0 : vector<16x1xi32> to vector<16x50xi32>
    %3 = arith.cmpi eq, %2, %1 : vector<16x50xi32>
    %4 = arith.extui %3 : vector<16x50xi1> to vector<16x50xi32>
    %5 = arith.sitofp %4 : vector<16x50xi32> to vector<16x50xf32>
    %c0_1 = arith.constant 0 : index
    %c0_2 = arith.constant 0 : index
    %6 = vector.load %arg1[%c0_1, %c0_2] : memref<50x32xf32, #tpu.memory_space<vmem>>, vector<50x32xf32>
    %cst = arith.constant dense<0.000000e+00> : vector<16x32xf32>
    %7 = tpu.matmul %5, %6, %cst {dimension_numbers = #tpu.dot_dimension_numbers<[1], [0], [0], [1], [0, 0, 1, 1], [], []>} : vector<16x50xf32>, vector<50x32xf32>, vector<16x32xf32> -> vector<16x32xf32>
    %c0_3 = arith.constant 0 : index
    %c0_4 = arith.constant 0 : index
    %8 = vector.load %arg2[%c0_3, %c0_4] : memref<16x32xf32, #tpu.memory_space<vmem>>, vector<8x32xf32>
    %9 = tpu.concatenate %8, %8 in 0 : vector<8x32xf32>, vector<8x32xf32> -> vector<16x32xf32>
    %10 = arith.addf %7, %9 : vector<16x32xf32>
    %c0_5 = arith.constant 0 : index
    %c0_6 = arith.constant 0 : index
    %11 = vector.load %arg3[%c0_5, %c0_6] : memref<2x32xf32, #tpu.memory_space<vmem>>, vector<2x32xf32>
    %12 = vector.extract_strided_slice %11 {offsets = [0, 0], sizes = [1, 32], strides = [1, 1]} : vector<2x32xf32> to vector<1x32xf32>
    %13 = vector.extract_strided_slice %11 {offsets = [1, 0], sizes = [1, 32], strides = [1, 1]} : vector<2x32xf32> to vector<1x32xf32>
    %cst_7 = arith.constant dense<0.000000e+00> : vector<16xf32>
    %14 = vector.multi_reduction <add>, %10, %cst_7 [1] : vector<16x32xf32> to vector<16xf32>
    %15 = vector.shape_cast %14 : vector<16xf32> to vector<16x1xf32>
    %cst_8 = arith.constant 3.200000e+01 : f32
    %16 = vector.broadcast %cst_8 : f32 to vector<16x1xf32>
    %17 = arith.divf %15, %16 : vector<16x1xf32>
    %18 = vector.broadcast %17 : vector<16x1xf32> to vector<16x32xf32>
    %19 = arith.subf %10, %18 : vector<16x32xf32>
    %20 = arith.mulf %19, %19 : vector<16x32xf32>
    %cst_9 = arith.constant dense<0.000000e+00> : vector<16xf32>
    %21 = vector.multi_reduction <add>, %20, %cst_9 [1] : vector<16x32xf32> to vector<16xf32>
    %22 = vector.shape_cast %21 : vector<16xf32> to vector<16x1xf32>
    %cst_10 = arith.constant 3.200000e+01 : f32
    %23 = vector.broadcast %cst_10 : f32 to vector<16x1xf32>
    %24 = arith.divf %22, %23 : vector<16x1xf32>
    %25 = vector.broadcast %17 : vector<16x1xf32> to vector<16x32xf32>
    %26 = arith.subf %10, %25 : vector<16x32xf32>
    %cst_11 = arith.constant 9.99999996E-13 : f32
    %27 = vector.broadcast %cst_11 : f32 to vector<16x1xf32>
    %28 = arith.addf %24, %27 : vector<16x1xf32>
    %29 = math.rsqrt %28 : vector<16x1xf32>
    %30 = vector.broadcast %29 : vector<16x1xf32> to vector<16x32xf32>
    %31 = arith.mulf %26, %30 : vector<16x32xf32>
    %32 = vector.broadcast %12 : vector<1x32xf32> to vector<16x32xf32>
    %33 = arith.mulf %31, %32 : vector<16x32xf32>
    %34 = vector.broadcast %13 : vector<1x32xf32> to vector<16x32xf32>
    %35 = arith.addf %33, %34 : vector<16x32xf32>
    %c0_12 = arith.constant 0 : index
    %c0_13 = arith.constant 0 : index
    %c0_14 = arith.constant 0 : index
    %36 = vector.load %arg4[%c0_12, %c0_13, %c0_14] : memref<2x32x128xf32, #tpu.memory_space<vmem>>, vector<1x32x128xf32>
    %37 = vector.shape_cast %36 : vector<1x32x128xf32> to vector<32x128xf32>
    %38 = vector.extract_strided_slice %37 {offsets = [0, 0], sizes = [32, 96], strides = [1, 1]} : vector<32x128xf32> to vector<32x96xf32>
    %39 = vector.extract_strided_slice %37 {offsets = [0, 96], sizes = [32, 32], strides = [1, 1]} : vector<32x128xf32> to vector<32x32xf32>
    %c0_15 = arith.constant 0 : index
    %c0_16 = arith.constant 0 : index
    %c0_17 = arith.constant 0 : index
    %40 = vector.load %arg9[%c0_15, %c0_16, %c0_17] : memref<2x8x32xf32, #tpu.memory_space<vmem>>, vector<1x8x32xf32>
    %41 = vector.shape_cast %40 : vector<1x8x32xf32> to vector<8x32xf32>
    %42 = vector.extract_strided_slice %41 {offsets = [0, 0], sizes = [1, 32], strides = [1, 1]} : vector<8x32xf32> to vector<1x32xf32>
    %43 = vector.extract_strided_slice %41 {offsets = [1, 0], sizes = [1, 32], strides = [1, 1]} : vector<8x32xf32> to vector<1x32xf32>
    %44 = vector.extract_strided_slice %41 {offsets = [2, 0], sizes = [1, 32], strides = [1, 1]} : vector<8x32xf32> to vector<1x32xf32>
    %45 = vector.extract_strided_slice %41 {offsets = [3, 0], sizes = [1, 32], strides = [1, 1]} : vector<8x32xf32> to vector<1x32xf32>
    %46 = vector.extract_strided_slice %41 {offsets = [4, 0], sizes = [1, 32], strides = [1, 1]} : vector<8x32xf32> to vector<1x32xf32>
    %47 = vector.extract_strided_slice %41 {offsets = [5, 0], sizes = [1, 32], strides = [1, 1]} : vector<8x32xf32> to vector<1x32xf32>
    %cst_18 = arith.constant dense<0.000000e+00> : vector<16x96xf32>
    %48 = tpu.matmul %35, %38, %cst_18 {dimension_numbers = #tpu.dot_dimension_numbers<[1], [0], [0], [1], [0, 0, 1, 1], [], []>} : vector<16x32xf32>, vector<32x96xf32>, vector<16x96xf32> -> vector<16x96xf32>
    %c0_19 = arith.constant 0 : index
    %c0_20 = arith.constant 0 : index
    %c0_21 = arith.constant 0 : index
    %49 = vector.load %arg5[%c0_19, %c0_20, %c0_21] : memref<2x1x96xf32, #tpu.memory_space<vmem>>, vector<1x1x96xf32>
    %50 = vector.shape_cast %49 : vector<1x1x96xf32> to vector<1x96xf32>
    %51 = vector.broadcast %50 : vector<1x96xf32> to vector<16x96xf32>
    %52 = arith.addf %48, %51 : vector<16x96xf32>
    %53 = vector.shape_cast %52 : vector<16x96xf32> to vector<2x8x96xf32>
    %54 = vector.extract_strided_slice %53 {offsets = [0, 0, 0], sizes = [2, 8, 8], strides = [1, 1, 1]} : vector<2x8x96xf32> to vector<2x8x8xf32>
    %55 = vector.extract_strided_slice %53 {offsets = [0, 0, 32], sizes = [2, 8, 8], strides = [1, 1, 1]} : vector<2x8x96xf32> to vector<2x8x8xf32>
    %56 = vector.extract_strided_slice %53 {offsets = [0, 0, 64], sizes = [2, 8, 8], strides = [1, 1, 1]} : vector<2x8x96xf32> to vector<2x8x8xf32>
    "tpu.trace_start"() <{level = 10 : i32, message = "bqd,bkd->bqk"}> : () -> ()
    %cst_22 = arith.constant dense<0.000000e+00> : vector<2x8x8xf32>
    %57 = tpu.matmul %54, %55, %cst_22 {dimension_numbers = #tpu.dot_dimension_numbers<[2], [2], [1], [1], [0, 0, 0, 1, 1, 1], [0], [0]>} : vector<2x8x8xf32>, vector<2x8x8xf32>, vector<2x8x8xf32> -> vector<2x8x8xf32>
    "tpu.trace_stop"() : () -> ()
    %cst_23 = arith.constant dense<0xFF800000> : vector<2x8xf32>
    %58 = vector.multi_reduction <maximumf>, %57, %cst_23 [2] : vector<2x8x8xf32> to vector<2x8xf32>
    %59 = vector.shape_cast %58 : vector<2x8xf32> to vector<2x8x1xf32>
    %60 = vector.broadcast %59 : vector<2x8x1xf32> to vector<2x8x8xf32>
    %61 = arith.subf %57, %60 : vector<2x8x8xf32>
    %62 = math.exp %61 : vector<2x8x8xf32>
    %cst_24 = arith.constant dense<0.000000e+00> : vector<2x8xf32>
    %63 = vector.multi_reduction <add>, %62, %cst_24 [2] : vector<2x8x8xf32> to vector<2x8xf32>
    %64 = vector.shape_cast %63 : vector<2x8xf32> to vector<2x8x1xf32>
    %65 = tpu.reciprocal %64 {approx = true} : vector<2x8x1xf32> -> vector<2x8x1xf32>
    %66 = vector.broadcast %65 : vector<2x8x1xf32> to vector<2x8x8xf32>
    %67 = arith.mulf %62, %66 : vector<2x8x8xf32>
    "tpu.trace_start"() <{level = 10 : i32, message = "bqk,bkd->bqd"}> : () -> ()
    %cst_25 = arith.constant dense<0.000000e+00> : vector<2x8x8xf32>
    %68 = tpu.matmul %67, %56, %cst_25 {dimension_numbers = #tpu.dot_dimension_numbers<[2], [1], [1], [2], [0, 0, 0, 1, 1, 2], [0], [0]>} : vector<2x8x8xf32>, vector<2x8x8xf32>, vector<2x8x8xf32> -> vector<2x8x8xf32>
    "tpu.trace_stop"() : () -> ()
    %69 = vector.extract_strided_slice %53 {offsets = [0, 0, 8], sizes = [2, 8, 8], strides = [1, 1, 1]} : vector<2x8x96xf32> to vector<2x8x8xf32>
    %70 = vector.extract_strided_slice %53 {offsets = [0, 0, 40], sizes = [2, 8, 8], strides = [1, 1, 1]} : vector<2x8x96xf32> to vector<2x8x8xf32>
    %71 = vector.extract_strided_slice %53 {offsets = [0, 0, 72], sizes = [2, 8, 8], strides = [1, 1, 1]} : vector<2x8x96xf32> to vector<2x8x8xf32>
    "tpu.trace_start"() <{level = 10 : i32, message = "bqd,bkd->bqk"}> : () -> ()
    %cst_26 = arith.constant dense<0.000000e+00> : vector<2x8x8xf32>
    %72 = tpu.matmul %69, %70, %cst_26 {dimension_numbers = #tpu.dot_dimension_numbers<[2], [2], [1], [1], [0, 0, 0, 1, 1, 1], [0], [0]>} : vector<2x8x8xf32>, vector<2x8x8xf32>, vector<2x8x8xf32> -> vector<2x8x8xf32>
    "tpu.trace_stop"() : () -> ()
    %cst_27 = arith.constant dense<0xFF800000> : vector<2x8xf32>
    %73 = vector.multi_reduction <maximumf>, %72, %cst_27 [2] : vector<2x8x8xf32> to vector<2x8xf32>
    %74 = vector.shape_cast %73 : vector<2x8xf32> to vector<2x8x1xf32>
    %75 = vector.broadcast %74 : vector<2x8x1xf32> to vector<2x8x8xf32>
    %76 = arith.subf %72, %75 : vector<2x8x8xf32>
    %77 = math.exp %76 : vector<2x8x8xf32>
    %cst_28 = arith.constant dense<0.000000e+00> : vector<2x8xf32>
    %78 = vector.multi_reduction <add>, %77, %cst_28 [2] : vector<2x8x8xf32> to vector<2x8xf32>
    %79 = vector.shape_cast %78 : vector<2x8xf32> to vector<2x8x1xf32>
    %80 = tpu.reciprocal %79 {approx = true} : vector<2x8x1xf32> -> vector<2x8x1xf32>
    %81 = vector.broadcast %80 : vector<2x8x1xf32> to vector<2x8x8xf32>
    %82 = arith.mulf %77, %81 : vector<2x8x8xf32>
    "tpu.trace_start"() <{level = 10 : i32, message = "bqk,bkd->bqd"}> : () -> ()
    %cst_29 = arith.constant dense<0.000000e+00> : vector<2x8x8xf32>
    %83 = tpu.matmul %82, %71, %cst_29 {dimension_numbers = #tpu.dot_dimension_numbers<[2], [1], [1], [2], [0, 0, 0, 1, 1, 2], [0], [0]>} : vector<2x8x8xf32>, vector<2x8x8xf32>, vector<2x8x8xf32> -> vector<2x8x8xf32>
    "tpu.trace_stop"() : () -> ()
    %84 = vector.extract_strided_slice %53 {offsets = [0, 0, 16], sizes = [2, 8, 8], strides = [1, 1, 1]} : vector<2x8x96xf32> to vector<2x8x8xf32>
    %85 = vector.extract_strided_slice %53 {offsets = [0, 0, 48], sizes = [2, 8, 8], strides = [1, 1, 1]} : vector<2x8x96xf32> to vector<2x8x8xf32>
    %86 = vector.extract_strided_slice %53 {offsets = [0, 0, 80], sizes = [2, 8, 8], strides = [1, 1, 1]} : vector<2x8x96xf32> to vector<2x8x8xf32>
    "tpu.trace_start"() <{level = 10 : i32, message = "bqd,bkd->bqk"}> : () -> ()
    %cst_30 = arith.constant dense<0.000000e+00> : vector<2x8x8xf32>
    %87 = tpu.matmul %84, %85, %cst_30 {dimension_numbers = #tpu.dot_dimension_numbers<[2], [2], [1], [1], [0, 0, 0, 1, 1, 1], [0], [0]>} : vector<2x8x8xf32>, vector<2x8x8xf32>, vector<2x8x8xf32> -> vector<2x8x8xf32>
    "tpu.trace_stop"() : () -> ()
    %cst_31 = arith.constant dense<0xFF800000> : vector<2x8xf32>
    %88 = vector.multi_reduction <maximumf>, %87, %cst_31 [2] : vector<2x8x8xf32> to vector<2x8xf32>
    %89 = vector.shape_cast %88 : vector<2x8xf32> to vector<2x8x1xf32>
    %90 = vector.broadcast %89 : vector<2x8x1xf32> to vector<2x8x8xf32>
    %91 = arith.subf %87, %90 : vector<2x8x8xf32>
    %92 = math.exp %91 : vector<2x8x8xf32>
    %cst_32 = arith.constant dense<0.000000e+00> : vector<2x8xf32>
    %93 = vector.multi_reduction <add>, %92, %cst_32 [2] : vector<2x8x8xf32> to vector<2x8xf32>
    %94 = vector.shape_cast %93 : vector<2x8xf32> to vector<2x8x1xf32>
    %95 = tpu.reciprocal %94 {approx = true} : vector<2x8x1xf32> -> vector<2x8x1xf32>
    %96 = vector.broadcast %95 : vector<2x8x1xf32> to vector<2x8x8xf32>
    %97 = arith.mulf %92, %96 : vector<2x8x8xf32>
    "tpu.trace_start"() <{level = 10 : i32, message = "bqk,bkd->bqd"}> : () -> ()
    %cst_33 = arith.constant dense<0.000000e+00> : vector<2x8x8xf32>
    %98 = tpu.matmul %97, %86, %cst_33 {dimension_numbers = #tpu.dot_dimension_numbers<[2], [1], [1], [2], [0, 0, 0, 1, 1, 2], [0], [0]>} : vector<2x8x8xf32>, vector<2x8x8xf32>, vector<2x8x8xf32> -> vector<2x8x8xf32>
    "tpu.trace_stop"() : () -> ()
    %99 = vector.extract_strided_slice %53 {offsets = [0, 0, 24], sizes = [2, 8, 8], strides = [1, 1, 1]} : vector<2x8x96xf32> to vector<2x8x8xf32>
    %100 = vector.extract_strided_slice %53 {offsets = [0, 0, 56], sizes = [2, 8, 8], strides = [1, 1, 1]} : vector<2x8x96xf32> to vector<2x8x8xf32>
    %101 = vector.extract_strided_slice %53 {offsets = [0, 0, 88], sizes = [2, 8, 8], strides = [1, 1, 1]} : vector<2x8x96xf32> to vector<2x8x8xf32>
    "tpu.trace_start"() <{level = 10 : i32, message = "bqd,bkd->bqk"}> : () -> ()
    %cst_34 = arith.constant dense<0.000000e+00> : vector<2x8x8xf32>
    %102 = tpu.matmul %99, %100, %cst_34 {dimension_numbers = #tpu.dot_dimension_numbers<[2], [2], [1], [1], [0, 0, 0, 1, 1, 1], [0], [0]>} : vector<2x8x8xf32>, vector<2x8x8xf32>, vector<2x8x8xf32> -> vector<2x8x8xf32>
    "tpu.trace_stop"() : () -> ()
    %cst_35 = arith.constant dense<0xFF800000> : vector<2x8xf32>
    %103 = vector.multi_reduction <maximumf>, %102, %cst_35 [2] : vector<2x8x8xf32> to vector<2x8xf32>
    %104 = vector.shape_cast %103 : vector<2x8xf32> to vector<2x8x1xf32>
    %105 = vector.broadcast %104 : vector<2x8x1xf32> to vector<2x8x8xf32>
    %106 = arith.subf %102, %105 : vector<2x8x8xf32>
    %107 = math.exp %106 : vector<2x8x8xf32>
    %cst_36 = arith.constant dense<0.000000e+00> : vector<2x8xf32>
    %108 = vector.multi_reduction <add>, %107, %cst_36 [2] : vector<2x8x8xf32> to vector<2x8xf32>
    %109 = vector.shape_cast %108 : vector<2x8xf32> to vector<2x8x1xf32>
    %110 = tpu.reciprocal %109 {approx = true} : vector<2x8x1xf32> -> vector<2x8x1xf32>
    %111 = vector.broadcast %110 : vector<2x8x1xf32> to vector<2x8x8xf32>
    %112 = arith.mulf %107, %111 : vector<2x8x8xf32>
    "tpu.trace_start"() <{level = 10 : i32, message = "bqk,bkd->bqd"}> : () -> ()
    %cst_37 = arith.constant dense<0.000000e+00> : vector<2x8x8xf32>
    %113 = tpu.matmul %112, %101, %cst_37 {dimension_numbers = #tpu.dot_dimension_numbers<[2], [1], [1], [2], [0, 0, 0, 1, 1, 2], [0], [0]>} : vector<2x8x8xf32>, vector<2x8x8xf32>, vector<2x8x8xf32> -> vector<2x8x8xf32>
    "tpu.trace_stop"() : () -> ()
    %114 = tpu.concatenate %68, %83, %98, %113 in 2 : vector<2x8x8xf32>, vector<2x8x8xf32>, vector<2x8x8xf32>, vector<2x8x8xf32> -> vector<2x8x32xf32>
    %115 = vector.shape_cast %114 : vector<2x8x32xf32> to vector<16x32xf32>
    %cst_38 = arith.constant dense<0.000000e+00> : vector<16x32xf32>
    %116 = tpu.matmul %115, %39, %cst_38 {dimension_numbers = #tpu.dot_dimension_numbers<[1], [0], [0], [1], [0, 0, 1, 1], [], []>} : vector<16x32xf32>, vector<32x32xf32>, vector<16x32xf32> -> vector<16x32xf32>
    %117 = vector.broadcast %42 : vector<1x32xf32> to vector<16x32xf32>
    %118 = arith.addf %116, %117 : vector<16x32xf32>
    %119 = arith.addf %35, %118 : vector<16x32xf32>
    %cst_39 = arith.constant dense<0.000000e+00> : vector<16xf32>
    %120 = vector.multi_reduction <add>, %119, %cst_39 [1] : vector<16x32xf32> to vector<16xf32>
    %121 = vector.shape_cast %120 : vector<16xf32> to vector<16x1xf32>
    %cst_40 = arith.constant 3.200000e+01 : f32
    %122 = vector.broadcast %cst_40 : f32 to vector<16x1xf32>
    %123 = arith.divf %121, %122 : vector<16x1xf32>
    %124 = vector.broadcast %123 : vector<16x1xf32> to vector<16x32xf32>
    %125 = arith.subf %119, %124 : vector<16x32xf32>
    %126 = arith.mulf %125, %125 : vector<16x32xf32>
    %cst_41 = arith.constant dense<0.000000e+00> : vector<16xf32>
    %127 = vector.multi_reduction <add>, %126, %cst_41 [1] : vector<16x32xf32> to vector<16xf32>
    %128 = vector.shape_cast %127 : vector<16xf32> to vector<16x1xf32>
    %cst_42 = arith.constant 3.200000e+01 : f32
    %129 = vector.broadcast %cst_42 : f32 to vector<16x1xf32>
    %130 = arith.divf %128, %129 : vector<16x1xf32>
    %131 = vector.broadcast %123 : vector<16x1xf32> to vector<16x32xf32>
    %132 = arith.subf %119, %131 : vector<16x32xf32>
    %cst_43 = arith.constant 9.99999996E-13 : f32
    %133 = vector.broadcast %cst_43 : f32 to vector<16x1xf32>
    %134 = arith.addf %130, %133 : vector<16x1xf32>
    %135 = math.rsqrt %134 : vector<16x1xf32>
    %136 = vector.broadcast %135 : vector<16x1xf32> to vector<16x32xf32>
    %137 = arith.mulf %132, %136 : vector<16x32xf32>
    %138 = vector.broadcast %43 : vector<1x32xf32> to vector<16x32xf32>
    %139 = arith.mulf %137, %138 : vector<16x32xf32>
    %140 = vector.broadcast %44 : vector<1x32xf32> to vector<16x32xf32>
    %141 = arith.addf %139, %140 : vector<16x32xf32>
    %c0_44 = arith.constant 0 : index
    %c0_45 = arith.constant 0 : index
    %c0_46 = arith.constant 0 : index
    %142 = vector.load %arg6[%c0_44, %c0_45, %c0_46] : memref<2x32x64xf32, #tpu.memory_space<vmem>>, vector<1x32x64xf32>
    %143 = vector.shape_cast %142 : vector<1x32x64xf32> to vector<32x64xf32>
    %cst_47 = arith.constant dense<0.000000e+00> : vector<16x64xf32>
    %144 = tpu.matmul %141, %143, %cst_47 {dimension_numbers = #tpu.dot_dimension_numbers<[1], [0], [0], [1], [0, 0, 1, 1], [], []>} : vector<16x32xf32>, vector<32x64xf32>, vector<16x64xf32> -> vector<16x64xf32>
    %c0_48 = arith.constant 0 : index
    %c0_49 = arith.constant 0 : index
    %c0_50 = arith.constant 0 : index
    %145 = vector.load %arg7[%c0_48, %c0_49, %c0_50] : memref<2x1x64xf32, #tpu.memory_space<vmem>>, vector<1x1x64xf32>
    %146 = vector.shape_cast %145 : vector<1x1x64xf32> to vector<1x64xf32>
    %147 = vector.broadcast %146 : vector<1x64xf32> to vector<16x64xf32>
    %148 = arith.addf %144, %147 : vector<16x64xf32>
    %cst_51 = arith.constant 5.000000e-01 : f32
    %149 = vector.broadcast %cst_51 : f32 to vector<16x64xf32>
    %150 = arith.mulf %149, %148 : vector<16x64xf32>
    %cst_52 = arith.constant 4.471500e-02 : f32
    %151 = vector.broadcast %cst_52 : f32 to vector<16x64xf32>
    %152 = arith.mulf %151, %148 : vector<16x64xf32>
    %153 = arith.mulf %152, %148 : vector<16x64xf32>
    %154 = arith.mulf %153, %148 : vector<16x64xf32>
    %155 = arith.addf %148, %154 : vector<16x64xf32>
    %cst_53 = arith.constant 0.797884583 : f32
    %156 = vector.broadcast %cst_53 : f32 to vector<16x64xf32>
    %157 = arith.mulf %156, %155 : vector<16x64xf32>
    %158 = math.tanh %157 : vector<16x64xf32>
    %cst_54 = arith.constant 1.000000e+00 : f32
    %159 = vector.broadcast %cst_54 : f32 to vector<16x64xf32>
    %160 = arith.addf %159, %158 : vector<16x64xf32>
    %161 = arith.mulf %150, %160 : vector<16x64xf32>
    %c0_55 = arith.constant 0 : index
    %c0_56 = arith.constant 0 : index
    %c0_57 = arith.constant 0 : index
    %162 = vector.load %arg8[%c0_55, %c0_56, %c0_57] : memref<2x64x32xf32, #tpu.memory_space<vmem>>, vector<1x64x32xf32>
    %163 = vector.shape_cast %162 : vector<1x64x32xf32> to vector<64x32xf32>
    %cst_58 = arith.constant dense<0.000000e+00> : vector<16x32xf32>
    %164 = tpu.matmul %161, %163, %cst_58 {dimension_numbers = #tpu.dot_dimension_numbers<[1], [0], [0], [1], [0, 0, 1, 1], [], []>} : vector<16x64xf32>, vector<64x32xf32>, vector<16x32xf32> -> vector<16x32xf32>
    %165 = vector.broadcast %45 : vector<1x32xf32> to vector<16x32xf32>
    %166 = arith.addf %164, %165 : vector<16x32xf32>
    %167 = arith.addf %141, %166 : vector<16x32xf32>
    %cst_59 = arith.constant dense<0.000000e+00> : vector<16xf32>
    %168 = vector.multi_reduction <add>, %167, %cst_59 [1] : vector<16x32xf32> to vector<16xf32>
    %169 = vector.shape_cast %168 : vector<16xf32> to vector<16x1xf32>
    %cst_60 = arith.constant 3.200000e+01 : f32
    %170 = vector.broadcast %cst_60 : f32 to vector<16x1xf32>
    %171 = arith.divf %169, %170 : vector<16x1xf32>
    %172 = vector.broadcast %171 : vector<16x1xf32> to vector<16x32xf32>
    %173 = arith.subf %167, %172 : vector<16x32xf32>
    %174 = arith.mulf %173, %173 : vector<16x32xf32>
    %cst_61 = arith.constant dense<0.000000e+00> : vector<16xf32>
    %175 = vector.multi_reduction <add>, %174, %cst_61 [1] : vector<16x32xf32> to vector<16xf32>
    %176 = vector.shape_cast %175 : vector<16xf32> to vector<16x1xf32>
    %cst_62 = arith.constant 3.200000e+01 : f32
    %177 = vector.broadcast %cst_62 : f32 to vector<16x1xf32>
    %178 = arith.divf %176, %177 : vector<16x1xf32>
    %179 = vector.broadcast %171 : vector<16x1xf32> to vector<16x32xf32>
    %180 = arith.subf %167, %179 : vector<16x32xf32>
    %cst_63 = arith.constant 9.99999996E-13 : f32
    %181 = vector.broadcast %cst_63 : f32 to vector<16x1xf32>
    %182 = arith.addf %178, %181 : vector<16x1xf32>
    %183 = math.rsqrt %182 : vector<16x1xf32>
    %184 = vector.broadcast %183 : vector<16x1xf32> to vector<16x32xf32>
    %185 = arith.mulf %180, %184 : vector<16x32xf32>
    %186 = vector.broadcast %46 : vector<1x32xf32> to vector<16x32xf32>
    %187 = arith.mulf %185, %186 : vector<16x32xf32>
    %188 = vector.broadcast %47 : vector<1x32xf32> to vector<16x32xf32>
    %189 = arith.addf %187, %188 : vector<16x32xf32>
    %c1 = arith.constant 1 : index
    %c0_64 = arith.constant 0 : index
    %c0_65 = arith.constant 0 : index
    %190 = vector.load %arg4[%c1, %c0_64, %c0_65] : memref<2x32x128xf32, #tpu.memory_space<vmem>>, vector<1x32x128xf32>
    %191 = vector.shape_cast %190 : vector<1x32x128xf32> to vector<32x128xf32>
    %192 = vector.extract_strided_slice %191 {offsets = [0, 0], sizes = [32, 96], strides = [1, 1]} : vector<32x128xf32> to vector<32x96xf32>
    %193 = vector.extract_strided_slice %191 {offsets = [0, 96], sizes = [32, 32], strides = [1, 1]} : vector<32x128xf32> to vector<32x32xf32>
    %c1_66 = arith.constant 1 : index
    %c0_67 = arith.constant 0 : index
    %c0_68 = arith.constant 0 : index
    %194 = vector.load %arg9[%c1_66, %c0_67, %c0_68] : memref<2x8x32xf32, #tpu.memory_space<vmem>>, vector<1x8x32xf32>
    %195 = vector.shape_cast %194 : vector<1x8x32xf32> to vector<8x32xf32>
    %196 = vector.extract_strided_slice %195 {offsets = [0, 0], sizes = [1, 32], strides = [1, 1]} : vector<8x32xf32> to vector<1x32xf32>
    %197 = vector.extract_strided_slice %195 {offsets = [1, 0], sizes = [1, 32], strides = [1, 1]} : vector<8x32xf32> to vector<1x32xf32>
    %198 = vector.extract_strided_slice %195 {offsets = [2, 0], sizes = [1, 32], strides = [1, 1]} : vector<8x32xf32> to vector<1x32xf32>
    %199 = vector.extract_strided_slice %195 {offsets = [3, 0], sizes = [1, 32], strides = [1, 1]} : vector<8x32xf32> to vector<1x32xf32>
    %200 = vector.extract_strided_slice %195 {offsets = [4, 0], sizes = [1, 32], strides = [1, 1]} : vector<8x32xf32> to vector<1x32xf32>
    %201 = vector.extract_strided_slice %195 {offsets = [5, 0], sizes = [1, 32], strides = [1, 1]} : vector<8x32xf32> to vector<1x32xf32>
    %cst_69 = arith.constant dense<0.000000e+00> : vector<16x96xf32>
    %202 = tpu.matmul %189, %192, %cst_69 {dimension_numbers = #tpu.dot_dimension_numbers<[1], [0], [0], [1], [0, 0, 1, 1], [], []>} : vector<16x32xf32>, vector<32x96xf32>, vector<16x96xf32> -> vector<16x96xf32>
    %c1_70 = arith.constant 1 : index
    %c0_71 = arith.constant 0 : index
    %c0_72 = arith.constant 0 : index
    %203 = vector.load %arg5[%c1_70, %c0_71, %c0_72] : memref<2x1x96xf32, #tpu.memory_space<vmem>>, vector<1x1x96xf32>
    %204 = vector.shape_cast %203 : vector<1x1x96xf32> to vector<1x96xf32>
    %205 = vector.broadcast %204 : vector<1x96xf32> to vector<16x96xf32>
    %206 = arith.addf %202, %205 : vector<16x96xf32>
    %207 = vector.shape_cast %206 : vector<16x96xf32> to vector<2x8x96xf32>
    %208 = vector.extract_strided_slice %207 {offsets = [0, 0, 0], sizes = [2, 8, 8], strides = [1, 1, 1]} : vector<2x8x96xf32> to vector<2x8x8xf32>
    %209 = vector.extract_strided_slice %207 {offsets = [0, 0, 32], sizes = [2, 8, 8], strides = [1, 1, 1]} : vector<2x8x96xf32> to vector<2x8x8xf32>
    %210 = vector.extract_strided_slice %207 {offsets = [0, 0, 64], sizes = [2, 8, 8], strides = [1, 1, 1]} : vector<2x8x96xf32> to vector<2x8x8xf32>
    "tpu.trace_start"() <{level = 10 : i32, message = "bqd,bkd->bqk"}> : () -> ()
    %cst_73 = arith.constant dense<0.000000e+00> : vector<2x8x8xf32>
    %211 = tpu.matmul %208, %209, %cst_73 {dimension_numbers = #tpu.dot_dimension_numbers<[2], [2], [1], [1], [0, 0, 0, 1, 1, 1], [0], [0]>} : vector<2x8x8xf32>, vector<2x8x8xf32>, vector<2x8x8xf32> -> vector<2x8x8xf32>
    "tpu.trace_stop"() : () -> ()
    %cst_74 = arith.constant dense<0xFF800000> : vector<2x8xf32>
    %212 = vector.multi_reduction <maximumf>, %211, %cst_74 [2] : vector<2x8x8xf32> to vector<2x8xf32>
    %213 = vector.shape_cast %212 : vector<2x8xf32> to vector<2x8x1xf32>
    %214 = vector.broadcast %213 : vector<2x8x1xf32> to vector<2x8x8xf32>
    %215 = arith.subf %211, %214 : vector<2x8x8xf32>
    %216 = math.exp %215 : vector<2x8x8xf32>
    %cst_75 = arith.constant dense<0.000000e+00> : vector<2x8xf32>
    %217 = vector.multi_reduction <add>, %216, %cst_75 [2] : vector<2x8x8xf32> to vector<2x8xf32>
    %218 = vector.shape_cast %217 : vector<2x8xf32> to vector<2x8x1xf32>
    %219 = tpu.reciprocal %218 {approx = true} : vector<2x8x1xf32> -> vector<2x8x1xf32>
    %220 = vector.broadcast %219 : vector<2x8x1xf32> to vector<2x8x8xf32>
    %221 = arith.mulf %216, %220 : vector<2x8x8xf32>
    "tpu.trace_start"() <{level = 10 : i32, message = "bqk,bkd->bqd"}> : () -> ()
    %cst_76 = arith.constant dense<0.000000e+00> : vector<2x8x8xf32>
    %222 = tpu.matmul %221, %210, %cst_76 {dimension_numbers = #tpu.dot_dimension_numbers<[2], [1], [1], [2], [0, 0, 0, 1, 1, 2], [0], [0]>} : vector<2x8x8xf32>, vector<2x8x8xf32>, vector<2x8x8xf32> -> vector<2x8x8xf32>
    "tpu.trace_stop"() : () -> ()
    %223 = vector.extract_strided_slice %207 {offsets = [0, 0, 8], sizes = [2, 8, 8], strides = [1, 1, 1]} : vector<2x8x96xf32> to vector<2x8x8xf32>
    %224 = vector.extract_strided_slice %207 {offsets = [0, 0, 40], sizes = [2, 8, 8], strides = [1, 1, 1]} : vector<2x8x96xf32> to vector<2x8x8xf32>
    %225 = vector.extract_strided_slice %207 {offsets = [0, 0, 72], sizes = [2, 8, 8], strides = [1, 1, 1]} : vector<2x8x96xf32> to vector<2x8x8xf32>
    "tpu.trace_start"() <{level = 10 : i32, message = "bqd,bkd->bqk"}> : () -> ()
    %cst_77 = arith.constant dense<0.000000e+00> : vector<2x8x8xf32>
    %226 = tpu.matmul %223, %224, %cst_77 {dimension_numbers = #tpu.dot_dimension_numbers<[2], [2], [1], [1], [0, 0, 0, 1, 1, 1], [0], [0]>} : vector<2x8x8xf32>, vector<2x8x8xf32>, vector<2x8x8xf32> -> vector<2x8x8xf32>
    "tpu.trace_stop"() : () -> ()
    %cst_78 = arith.constant dense<0xFF800000> : vector<2x8xf32>
    %227 = vector.multi_reduction <maximumf>, %226, %cst_78 [2] : vector<2x8x8xf32> to vector<2x8xf32>
    %228 = vector.shape_cast %227 : vector<2x8xf32> to vector<2x8x1xf32>
    %229 = vector.broadcast %228 : vector<2x8x1xf32> to vector<2x8x8xf32>
    %230 = arith.subf %226, %229 : vector<2x8x8xf32>
    %231 = math.exp %230 : vector<2x8x8xf32>
    %cst_79 = arith.constant dense<0.000000e+00> : vector<2x8xf32>
    %232 = vector.multi_reduction <add>, %231, %cst_79 [2] : vector<2x8x8xf32> to vector<2x8xf32>
    %233 = vector.shape_cast %232 : vector<2x8xf32> to vector<2x8x1xf32>
    %234 = tpu.reciprocal %233 {approx = true} : vector<2x8x1xf32> -> vector<2x8x1xf32>
    %235 = vector.broadcast %234 : vector<2x8x1xf32> to vector<2x8x8xf32>
    %236 = arith.mulf %231, %235 : vector<2x8x8xf32>
    "tpu.trace_start"() <{level = 10 : i32, message = "bqk,bkd->bqd"}> : () -> ()
    %cst_80 = arith.constant dense<0.000000e+00> : vector<2x8x8xf32>
    %237 = tpu.matmul %236, %225, %cst_80 {dimension_numbers = #tpu.dot_dimension_numbers<[2], [1], [1], [2], [0, 0, 0, 1, 1, 2], [0], [0]>} : vector<2x8x8xf32>, vector<2x8x8xf32>, vector<2x8x8xf32> -> vector<2x8x8xf32>
    "tpu.trace_stop"() : () -> ()
    %238 = vector.extract_strided_slice %207 {offsets = [0, 0, 16], sizes = [2, 8, 8], strides = [1, 1, 1]} : vector<2x8x96xf32> to vector<2x8x8xf32>
    %239 = vector.extract_strided_slice %207 {offsets = [0, 0, 48], sizes = [2, 8, 8], strides = [1, 1, 1]} : vector<2x8x96xf32> to vector<2x8x8xf32>
    %240 = vector.extract_strided_slice %207 {offsets = [0, 0, 80], sizes = [2, 8, 8], strides = [1, 1, 1]} : vector<2x8x96xf32> to vector<2x8x8xf32>
    "tpu.trace_start"() <{level = 10 : i32, message = "bqd,bkd->bqk"}> : () -> ()
    %cst_81 = arith.constant dense<0.000000e+00> : vector<2x8x8xf32>
    %241 = tpu.matmul %238, %239, %cst_81 {dimension_numbers = #tpu.dot_dimension_numbers<[2], [2], [1], [1], [0, 0, 0, 1, 1, 1], [0], [0]>} : vector<2x8x8xf32>, vector<2x8x8xf32>, vector<2x8x8xf32> -> vector<2x8x8xf32>
    "tpu.trace_stop"() : () -> ()
    %cst_82 = arith.constant dense<0xFF800000> : vector<2x8xf32>
    %242 = vector.multi_reduction <maximumf>, %241, %cst_82 [2] : vector<2x8x8xf32> to vector<2x8xf32>
    %243 = vector.shape_cast %242 : vector<2x8xf32> to vector<2x8x1xf32>
    %244 = vector.broadcast %243 : vector<2x8x1xf32> to vector<2x8x8xf32>
    %245 = arith.subf %241, %244 : vector<2x8x8xf32>
    %246 = math.exp %245 : vector<2x8x8xf32>
    %cst_83 = arith.constant dense<0.000000e+00> : vector<2x8xf32>
    %247 = vector.multi_reduction <add>, %246, %cst_83 [2] : vector<2x8x8xf32> to vector<2x8xf32>
    %248 = vector.shape_cast %247 : vector<2x8xf32> to vector<2x8x1xf32>
    %249 = tpu.reciprocal %248 {approx = true} : vector<2x8x1xf32> -> vector<2x8x1xf32>
    %250 = vector.broadcast %249 : vector<2x8x1xf32> to vector<2x8x8xf32>
    %251 = arith.mulf %246, %250 : vector<2x8x8xf32>
    "tpu.trace_start"() <{level = 10 : i32, message = "bqk,bkd->bqd"}> : () -> ()
    %cst_84 = arith.constant dense<0.000000e+00> : vector<2x8x8xf32>
    %252 = tpu.matmul %251, %240, %cst_84 {dimension_numbers = #tpu.dot_dimension_numbers<[2], [1], [1], [2], [0, 0, 0, 1, 1, 2], [0], [0]>} : vector<2x8x8xf32>, vector<2x8x8xf32>, vector<2x8x8xf32> -> vector<2x8x8xf32>
    "tpu.trace_stop"() : () -> ()
    %253 = vector.extract_strided_slice %207 {offsets = [0, 0, 24], sizes = [2, 8, 8], strides = [1, 1, 1]} : vector<2x8x96xf32> to vector<2x8x8xf32>
    %254 = vector.extract_strided_slice %207 {offsets = [0, 0, 56], sizes = [2, 8, 8], strides = [1, 1, 1]} : vector<2x8x96xf32> to vector<2x8x8xf32>
    %255 = vector.extract_strided_slice %207 {offsets = [0, 0, 88], sizes = [2, 8, 8], strides = [1, 1, 1]} : vector<2x8x96xf32> to vector<2x8x8xf32>
    "tpu.trace_start"() <{level = 10 : i32, message = "bqd,bkd->bqk"}> : () -> ()
    %cst_85 = arith.constant dense<0.000000e+00> : vector<2x8x8xf32>
    %256 = tpu.matmul %253, %254, %cst_85 {dimension_numbers = #tpu.dot_dimension_numbers<[2], [2], [1], [1], [0, 0, 0, 1, 1, 1], [0], [0]>} : vector<2x8x8xf32>, vector<2x8x8xf32>, vector<2x8x8xf32> -> vector<2x8x8xf32>
    "tpu.trace_stop"() : () -> ()
    %cst_86 = arith.constant dense<0xFF800000> : vector<2x8xf32>
    %257 = vector.multi_reduction <maximumf>, %256, %cst_86 [2] : vector<2x8x8xf32> to vector<2x8xf32>
    %258 = vector.shape_cast %257 : vector<2x8xf32> to vector<2x8x1xf32>
    %259 = vector.broadcast %258 : vector<2x8x1xf32> to vector<2x8x8xf32>
    %260 = arith.subf %256, %259 : vector<2x8x8xf32>
    %261 = math.exp %260 : vector<2x8x8xf32>
    %cst_87 = arith.constant dense<0.000000e+00> : vector<2x8xf32>
    %262 = vector.multi_reduction <add>, %261, %cst_87 [2] : vector<2x8x8xf32> to vector<2x8xf32>
    %263 = vector.shape_cast %262 : vector<2x8xf32> to vector<2x8x1xf32>
    %264 = tpu.reciprocal %263 {approx = true} : vector<2x8x1xf32> -> vector<2x8x1xf32>
    %265 = vector.broadcast %264 : vector<2x8x1xf32> to vector<2x8x8xf32>
    %266 = arith.mulf %261, %265 : vector<2x8x8xf32>
    "tpu.trace_start"() <{level = 10 : i32, message = "bqk,bkd->bqd"}> : () -> ()
    %cst_88 = arith.constant dense<0.000000e+00> : vector<2x8x8xf32>
    %267 = tpu.matmul %266, %255, %cst_88 {dimension_numbers = #tpu.dot_dimension_numbers<[2], [1], [1], [2], [0, 0, 0, 1, 1, 2], [0], [0]>} : vector<2x8x8xf32>, vector<2x8x8xf32>, vector<2x8x8xf32> -> vector<2x8x8xf32>
    "tpu.trace_stop"() : () -> ()
    %268 = tpu.concatenate %222, %237, %252, %267 in 2 : vector<2x8x8xf32>, vector<2x8x8xf32>, vector<2x8x8xf32>, vector<2x8x8xf32> -> vector<2x8x32xf32>
    %269 = vector.shape_cast %268 : vector<2x8x32xf32> to vector<16x32xf32>
    %cst_89 = arith.constant dense<0.000000e+00> : vector<16x32xf32>
    %270 = tpu.matmul %269, %193, %cst_89 {dimension_numbers = #tpu.dot_dimension_numbers<[1], [0], [0], [1], [0, 0, 1, 1], [], []>} : vector<16x32xf32>, vector<32x32xf32>, vector<16x32xf32> -> vector<16x32xf32>
    %271 = vector.broadcast %196 : vector<1x32xf32> to vector<16x32xf32>
    %272 = arith.addf %270, %271 : vector<16x32xf32>
    %273 = arith.addf %189, %272 : vector<16x32xf32>
    %cst_90 = arith.constant dense<0.000000e+00> : vector<16xf32>
    %274 = vector.multi_reduction <add>, %273, %cst_90 [1] : vector<16x32xf32> to vector<16xf32>
    %275 = vector.shape_cast %274 : vector<16xf32> to vector<16x1xf32>
    %cst_91 = arith.constant 3.200000e+01 : f32
    %276 = vector.broadcast %cst_91 : f32 to vector<16x1xf32>
    %277 = arith.divf %275, %276 : vector<16x1xf32>
    %278 = vector.broadcast %277 : vector<16x1xf32> to vector<16x32xf32>
    %279 = arith.subf %273, %278 : vector<16x32xf32>
    %280 = arith.mulf %279, %279 : vector<16x32xf32>
    %cst_92 = arith.constant dense<0.000000e+00> : vector<16xf32>
    %281 = vector.multi_reduction <add>, %280, %cst_92 [1] : vector<16x32xf32> to vector<16xf32>
    %282 = vector.shape_cast %281 : vector<16xf32> to vector<16x1xf32>
    %cst_93 = arith.constant 3.200000e+01 : f32
    %283 = vector.broadcast %cst_93 : f32 to vector<16x1xf32>
    %284 = arith.divf %282, %283 : vector<16x1xf32>
    %285 = vector.broadcast %277 : vector<16x1xf32> to vector<16x32xf32>
    %286 = arith.subf %273, %285 : vector<16x32xf32>
    %cst_94 = arith.constant 9.99999996E-13 : f32
    %287 = vector.broadcast %cst_94 : f32 to vector<16x1xf32>
    %288 = arith.addf %284, %287 : vector<16x1xf32>
    %289 = math.rsqrt %288 : vector<16x1xf32>
    %290 = vector.broadcast %289 : vector<16x1xf32> to vector<16x32xf32>
    %291 = arith.mulf %286, %290 : vector<16x32xf32>
    %292 = vector.broadcast %197 : vector<1x32xf32> to vector<16x32xf32>
    %293 = arith.mulf %291, %292 : vector<16x32xf32>
    %294 = vector.broadcast %198 : vector<1x32xf32> to vector<16x32xf32>
    %295 = arith.addf %293, %294 : vector<16x32xf32>
    %c1_95 = arith.constant 1 : index
    %c0_96 = arith.constant 0 : index
    %c0_97 = arith.constant 0 : index
    %296 = vector.load %arg6[%c1_95, %c0_96, %c0_97] : memref<2x32x64xf32, #tpu.memory_space<vmem>>, vector<1x32x64xf32>
    %297 = vector.shape_cast %296 : vector<1x32x64xf32> to vector<32x64xf32>
    %cst_98 = arith.constant dense<0.000000e+00> : vector<16x64xf32>
    %298 = tpu.matmul %295, %297, %cst_98 {dimension_numbers = #tpu.dot_dimension_numbers<[1], [0], [0], [1], [0, 0, 1, 1], [], []>} : vector<16x32xf32>, vector<32x64xf32>, vector<16x64xf32> -> vector<16x64xf32>
    %c1_99 = arith.constant 1 : index
    %c0_100 = arith.constant 0 : index
    %c0_101 = arith.constant 0 : index
    %299 = vector.load %arg7[%c1_99, %c0_100, %c0_101] : memref<2x1x64xf32, #tpu.memory_space<vmem>>, vector<1x1x64xf32>
    %300 = vector.shape_cast %299 : vector<1x1x64xf32> to vector<1x64xf32>
    %301 = vector.broadcast %300 : vector<1x64xf32> to vector<16x64xf32>
    %302 = arith.addf %298, %301 : vector<16x64xf32>
    %cst_102 = arith.constant 5.000000e-01 : f32
    %303 = vector.broadcast %cst_102 : f32 to vector<16x64xf32>
    %304 = arith.mulf %303, %302 : vector<16x64xf32>
    %cst_103 = arith.constant 4.471500e-02 : f32
    %305 = vector.broadcast %cst_103 : f32 to vector<16x64xf32>
    %306 = arith.mulf %305, %302 : vector<16x64xf32>
    %307 = arith.mulf %306, %302 : vector<16x64xf32>
    %308 = arith.mulf %307, %302 : vector<16x64xf32>
    %309 = arith.addf %302, %308 : vector<16x64xf32>
    %cst_104 = arith.constant 0.797884583 : f32
    %310 = vector.broadcast %cst_104 : f32 to vector<16x64xf32>
    %311 = arith.mulf %310, %309 : vector<16x64xf32>
    %312 = math.tanh %311 : vector<16x64xf32>
    %cst_105 = arith.constant 1.000000e+00 : f32
    %313 = vector.broadcast %cst_105 : f32 to vector<16x64xf32>
    %314 = arith.addf %313, %312 : vector<16x64xf32>
    %315 = arith.mulf %304, %314 : vector<16x64xf32>
    %c1_106 = arith.constant 1 : index
    %c0_107 = arith.constant 0 : index
    %c0_108 = arith.constant 0 : index
    %316 = vector.load %arg8[%c1_106, %c0_107, %c0_108] : memref<2x64x32xf32, #tpu.memory_space<vmem>>, vector<1x64x32xf32>
    %317 = vector.shape_cast %316 : vector<1x64x32xf32> to vector<64x32xf32>
    %cst_109 = arith.constant dense<0.000000e+00> : vector<16x32xf32>
    %318 = tpu.matmul %315, %317, %cst_109 {dimension_numbers = #tpu.dot_dimension_numbers<[1], [0], [0], [1], [0, 0, 1, 1], [], []>} : vector<16x64xf32>, vector<64x32xf32>, vector<16x32xf32> -> vector<16x32xf32>
    %319 = vector.broadcast %199 : vector<1x32xf32> to vector<16x32xf32>
    %320 = arith.addf %318, %319 : vector<16x32xf32>
    %321 = arith.addf %295, %320 : vector<16x32xf32>
    %cst_110 = arith.constant dense<0.000000e+00> : vector<16xf32>
    %322 = vector.multi_reduction <add>, %321, %cst_110 [1] : vector<16x32xf32> to vector<16xf32>
    %323 = vector.shape_cast %322 : vector<16xf32> to vector<16x1xf32>
    %cst_111 = arith.constant 3.200000e+01 : f32
    %324 = vector.broadcast %cst_111 : f32 to vector<16x1xf32>
    %325 = arith.divf %323, %324 : vector<16x1xf32>
    %326 = vector.broadcast %325 : vector<16x1xf32> to vector<16x32xf32>
    %327 = arith.subf %321, %326 : vector<16x32xf32>
    %328 = arith.mulf %327, %327 : vector<16x32xf32>
    %cst_112 = arith.constant dense<0.000000e+00> : vector<16xf32>
    %329 = vector.multi_reduction <add>, %328, %cst_112 [1] : vector<16x32xf32> to vector<16xf32>
    %330 = vector.shape_cast %329 : vector<16xf32> to vector<16x1xf32>
    %cst_113 = arith.constant 3.200000e+01 : f32
    %331 = vector.broadcast %cst_113 : f32 to vector<16x1xf32>
    %332 = arith.divf %330, %331 : vector<16x1xf32>
    %333 = vector.broadcast %325 : vector<16x1xf32> to vector<16x32xf32>
    %334 = arith.subf %321, %333 : vector<16x32xf32>
    %cst_114 = arith.constant 9.99999996E-13 : f32
    %335 = vector.broadcast %cst_114 : f32 to vector<16x1xf32>
    %336 = arith.addf %332, %335 : vector<16x1xf32>
    %337 = math.rsqrt %336 : vector<16x1xf32>
    %338 = vector.broadcast %337 : vector<16x1xf32> to vector<16x32xf32>
    %339 = arith.mulf %334, %338 : vector<16x32xf32>
    %340 = vector.broadcast %200 : vector<1x32xf32> to vector<16x32xf32>
    %341 = arith.mulf %339, %340 : vector<16x32xf32>
    %342 = vector.broadcast %201 : vector<1x32xf32> to vector<16x32xf32>
    %343 = arith.addf %341, %342 : vector<16x32xf32>
    %344 = vector.extract_strided_slice %343 {offsets = [0, 0], sizes = [1, 32], strides = [1, 1]} : vector<16x32xf32> to vector<1x32xf32>
    %345 = vector.extract_strided_slice %343 {offsets = [8, 0], sizes = [1, 32], strides = [1, 1]} : vector<16x32xf32> to vector<1x32xf32>
    %346 = tpu.concatenate %344, %345 in 0 : vector<1x32xf32>, vector<1x32xf32> -> vector<2x32xf32>
    %c0_115 = arith.constant 0 : index
    %c0_116 = arith.constant 0 : index
    %347 = vector.load %arg10[%c0_115, %c0_116] : memref<1x32xf32, #tpu.memory_space<vmem>>, vector<1x32xf32>
    %cst_117 = arith.constant dense<0.000000e+00> : vector<1x2xf32>
    %348 = tpu.matmul %347, %346, %cst_117 {dimension_numbers = #tpu.dot_dimension_numbers<[1], [1], [0], [0], [0, 0, 1, 0], [], []>} : vector<1x32xf32>, vector<2x32xf32>, vector<1x2xf32> -> vector<1x2xf32>
    %c0_118 = arith.constant 0 : index
    %c0_119 = arith.constant 0 : index
    %349 = vector.load %arg11[%c0_118, %c0_119] : memref<1x1xf32, #tpu.memory_space<vmem>>, vector<1x1xf32>
    %350 = vector.broadcast %349 : vector<1x1xf32> to vector<1x2xf32>
    %351 = arith.addf %348, %350 : vector<1x2xf32>
    %352 = arith.negf %351 : vector<1x2xf32>
    %353 = math.exp %352 : vector<1x2xf32>
    %cst_120 = arith.constant 1.000000e+00 : f32
    %354 = vector.broadcast %cst_120 : f32 to vector<1x2xf32>
    %355 = arith.addf %354, %353 : vector<1x2xf32>
    %356 = arith.divf %354, %355 : vector<1x2xf32>
    %c0_121 = arith.constant 0 : index
    %c0_122 = arith.constant 0 : index
    %357 = vector.load %arg12[%c0_121, %c0_122] : memref<1x2xf32, #tpu.memory_space<vmem>>, vector<1x2xf32>
    tpu.vector_store %arg12[%c0_121, %c0_122], %356 {strides = array<i32>} : memref<1x2xf32, #tpu.memory_space<vmem>>, vector<1x2xf32>,
    return
  }
}

</mosaic_0001>

<bundles_post_ra>
// kernel: distilbert_classifier_forward.1
= control target key start
LH: loop header
LB: loop body
LE: loop exit
PB: predicated region body
PF: predicated region fallthrough
CT: control target
= control target key end

     0   :  { %s2787_s0 = inlined_call_operand.vmem [shape: s32[16,1], index: 0, kind: input, shape index: {}]   ;;  %s2788_s1 = inlined_call_operand.vmem [shape: f32[50,32], index: 1, kind: input, shape index: {}]   ;;  %s2789_s2 = inlined_call_operand.vmem [shape: f32[16,32], index: 2, kind: input, shape index: {}]   ;;  %s2790_s3 = inlined_call_operand.vmem [shape: f32[2,32], index: 3, kind: input, shape index: {}]   ;;  %s2791_s4 = inlined_call_operand.vmem [shape: f32[2,32,128], index: 4, kind: input, shape index: {}]   ;;  %s2792_s5 = inlined_call_operand.vmem [shape: f32[2,1,96], index: 5, kind: input, shape index: {}]   ;;  %s2793_s6 = inlined_call_operand.vmem [shape: f32[2,32,64], index: 6, kind: input, shape index: {}]   ;;  %s2794_s7 = inlined_call_operand.vmem [shape: f32[2,1,64], index: 7, kind: input, shape index: {}]   ;;  %s2795_s8 = inlined_call_operand.vmem [shape: f32[2,64,32], index: 8, kind: input, shape index: {}]   ;;  %s2796_s9 = inlined_call_operand.vmem [shape: f32[2,8,32], index: 9, kind: input, shape index: {}]   ;;  %s2797_s10 = inlined_call_operand.vmem [shape: f32[1,32], index: 10, kind: input, shape index: {}]   ;;  %s2798_s11 = inlined_call_operand.<no memory space> [shape: f32[1,1], index: 11, kind: input, shape index: {}]   ;;  %s2799_s12 = inlined_call_operand.hbm [shape: f32[1,2], index: 12, kind: output, shape index: {}]  }
   0x1   :  { %v17_v0 = vstv %s2798_s11 }
   0x2   :  { %18 = vst [vmem:[#allocation2] sm:$0x1] %v17_v0 }
   0x3   :  { %v44_v1 = vld [vmem:[%s2787_s0] sm:$0xff]  ;;  %v66_v2 = vld [vmem:[%s2788_s1 + $0x30] sm:$0x3]  ;;  %vm75_vm0 = vcmask 1041408   ;;  %v2199_v3 = vmov 0   ;;  %v65_v4 = vld [vmem:[%s2788_s1 + $0x28] sm:$0xff] }
   0x4   :  { %2015 = vset.pattern.permute.xlu0 %v2199_v3  ;;  %1907 = vmatpush.msk.msra.mxu0 %vm75_vm0, %v66_v2  ;;  %v64_v5 = vld [vmem:[%s2788_s1 + $0x20] sm:$0xff]  ;;  %v63_v6 = vld [vmem:[%s2788_s1 + $0x18] sm:$0xff] }
   0x5   :  { %49 = vperm.xlu0 %2015, %v44_v1  }
   0x6   :  { %89 = vmatpush.msra.mxu0 %v65_v4 }
   0x7   :  { %19 = vsyncpa [#allocation4], 0  ;;  %v62_v7 = vld [vmem:[%s2788_s1 + $0x10] sm:$0xff]  ;;  %v45_v8 = vld [vmem:[%s2787_s0 + $0x8] sm:$0xff]  ;;  %v46_v11 = vlaneseq  ;;  %vm68_vm1 = vcmask 408576   ;;  %v2200_v14 = vmov 0.0  }
   0x8   :  { %90 = vmatpush.msra.mxu0 %v64_v5  ;;  %v61_v9 = vld [vmem:[%s2788_s1 + $0x8] sm:$0xff]  ;;  %v60_v10 = vld [vmem:[%s2788_s1] sm:$0xff]  ;;  %vm103_vm4 = vcmask 261120   ;;  %v2201_v25 = vmov 32.0   ;;  %v2327_v42 = vld [vmem:[%s2791_s4 + $0x18] sm:$0xff]  ;;  %s2202_s13 = smov 96  }
   0x9   :  { %v47_v12 = vand.u32 127, %v46_v11  ;;  %v67_v18 = vld [vmem:[%s2789_s2] sm:$0xff]  ;;  %2075 = vrcp.f32 %v2201_v25  ;;  %188 = vmatpush.msra.mxu1 %v2327_v42  ;;  %v2333_v43 = vld [vmem:[%s2791_s4 + $0x10] sm:$0xff]  ;;  %v2339_v44 = vld [vmem:[%s2791_s4 + $0x8] sm:$0xff]  ;;  %s2203_s14 = smov 88   ;;  %s2204_s15 = smov 120  }
   0xa   :  { %91 = vmatpush.msra.mxu0 %v63_v6  ;;  %v2345_v45 = vld [vmem:[%s2791_s4] sm:$0xff]  ;;  %v2036_v46 = vpack.i.bf16 %v2333_v43, %v2327_v42  ;;  %s2205_s16 = smov 80   ;;  %s2206_s17 = smov 72   ;;  %vm202_vm12 = vcmask 64512   ;;  %vm744_vm13 = vcmask 130048   ;;  %vm747_vm14 = vcmask 195584  }
   0xb   :  { %189 = vmatpush.msra.mxu1 %v2333_v43  ;;  %v2041_v47 = vpack.i.bf16 %v2345_v45, %v2339_v44  ;;  %v102_v59 = vld [vmem:[%s2790_s3] sm:$0x3]  ;;  %s2207_s18 = smov 104   ;;  %s2208_s19 = smov 64  }
   0xc   :  { %92 = vmatpush.msra.mxu0 %v62_v7  ;;  %v155_v63 = vperm.slane %v102_v59, 0  ;;  %v158_v3 = vperm.slane %v102_v59, 1  ;;  %s2209_s20 = smov 112   ;;  %s2210_s21 = smov 56  }
   0xd   :  { %52 = vperm.xlu0 %2015, %v45_v8   ;;  %190 = vmatpush.msra.mxu1 %v2339_v44  ;;  %s2211_s0 = smov 48   ;;  %s2212_s22 = smov 40  }
   0xe   :  { %93 = vmatpush.msra.mxu0 %v61_v9  ;;  %s2213_s1 = smov 32   ;;  %s2214_s2 = smov 8  }
   0xf   :  { %v2076_v26 = vpop.eup %2075  ;;  %191 = vmatpush.msra.mxu1 %v2345_v45  ;;  %s2802_s23 = smov 16   ;;  %s2800_s24 = smov 24  }
  0x10   :  { %94 = vmatpush.msra.mxu0 %v60_v10  ;;  %v111_v27 = vmul.f32 32.0, %v2076_v26  ;;  %vm115_vm5 = vweird.f32 %v2076_v26 }
  0x12   :  { %v112_v28 = vsub.f32 1.0, %v111_v27 }
  0x14   :  { %v113_v29 = vmul.f32 %v2076_v26, %v112_v28 }
  0x16   :  { %v114_v30 = vadd.f32 %v2076_v26, %v113_v29 }
  0x18   :  { %v2318_v31 = vsel %vm115_vm5, %v2076_v26, %v114_v30 }
  0x77   :  { %v50_v13 = vpop.permute.xlu0 %49 }
  0x78   :  { %vm54_vm2 = vcmp.eq.s32.totalorder %v50_v13, %v47_v12  ;;  %v2071_v13 = vld [vmem:[%s2792_s5] ss:$0 sm:$0xff] }
  0x79   :  { %v1905_v15 = vsel %vm54_vm2, 1.0, %v2200_v14 }
  0x7a   :  { %1908 = vmatmul.msk.f32.vlgmr.msra.gmra.mxu0 %vm68_vm1, %v1905_v15 }
  0x7f   :  { %v53_v16 = vpop.permute.xlu0 %52 }
  0x80   :  { %vm55_vm3 = vcmp.eq.s32.totalorder %v53_v16, %v47_v12 }
  0x81   :  { %v1906_v17 = vsel %vm55_vm3, 1.0, %v2200_v14 }
  0x82   :  { %1909 = vmatmul.msk.f32.gmra.mxu0 %vm68_vm1, %v1906_v17 }
  0xf7   :  { %v96_v19 = vpop.f32.mrf.mxu0 }
  0xf8   :  { %v97_v20 = vadd.f32 %v96_v19, %v67_v18 }
  0xfa   :  { %v104_v21 = vsel %vm103_vm4, %v97_v20, 0.0 }
  0xfb   :  { %105 = vadd.xlane.f32.xlu1 %v104_v21 }
  0xff   :  { %v99_v22 = vpop.f32.mrf.mxu0 }
 0x100   :  { %v100_v23 = vadd.f32 %v99_v22, %v67_v18 }
 0x102   :  { %v107_v24 = vsel %vm103_vm4, %v100_v23, 0.0 }
 0x103   :  { %108 = vadd.xlane.f32.xlu1 %v107_v24 }
 0x16e   :  { %v106_v32 = vpop.xlane.xlu1 %105 }
 0x16f   :  { %v117_v33 = vmul.f32 %v2318_v31, %v106_v32 }
 0x171   :  { %v119_v34 = vsub.f32 %v97_v20, %v117_v33 }
 0x173   :  { %v121_v35 = vmul.f32 %v119_v34, %v119_v34 }
 0x175   :  { %v123_v36 = vsel %vm103_vm4, %v121_v35, 0.0 }
 0x176   :  { %124 = vadd.xlane.f32.xlu2 %v123_v36  ;;  %v109_v37 = vpop.xlane.xlu1 %108 }
 0x177   :  { %v118_v38 = vmul.f32 %v2318_v31, %v109_v37 }
 0x179   :  { %v120_v39 = vsub.f32 %v100_v23, %v118_v38 }
 0x17b   :  { %v122_v40 = vmul.f32 %v120_v39, %v120_v39 }
 0x17d   :  { %v126_v41 = vsel %vm103_vm4, %v122_v40, 0.0 }
 0x17e   :  { %127 = vadd.xlane.f32.xlu2 %v126_v41 }
 0x1e9   :  { %v125_v48 = vpop.xlane.xlu2 %124 }
 0x1ea   :  { %v129_v49 = vmul.f32 %v125_v48, %v2318_v31 }
 0x1ec   :  { %v131_v50 = vadd.f32 1e-12, %v129_v49 }
 0x1ee   :  { %2077 = vrsqrt.f32 %v131_v50  ;;  %vm139_vm7 = vweird.f32 %v131_v50 }
 0x1f1   :  { %v128_v51 = vpop.xlane.xlu2 %127 }
 0x1f2   :  { %v130_v52 = vmul.f32 %v128_v51, %v2318_v31 }
 0x1f4   :  { %v2078_v53 = vpop.eup %2077  ;;  %v132_v54 = vadd.f32 1e-12, %v130_v52 }
 0x1f5   :  { %v134_v55 = vmul.f32 %v2078_v53, %v131_v50  ;;  %vm140_vm6 = vweird.f32 %v2078_v53 }
 0x1f6   :  { %2079 = vrsqrt.f32 %v132_v54  ;;  %vm141_vm8 = vmor %vm139_vm7, %vm140_vm6  ;;  %vm149_vm10 = vweird.f32 %v132_v54  ;;  %vm912_vm6 = vcmask 523264  }
 0x1f7   :  { %v135_v56 = vmul.f32 %v2078_v53, %v134_v55 }
 0x1f9   :  { %v136_v57 = vmul.f32 0.5, %v135_v56 }
 0x1fb   :  { %v137_v58 = vsub.f32 1.5, %v136_v57 }
 0x1fc   :  { %v2080_v60 = vpop.eup %2079 }
 0x1fd   :  { %v138_v61 = vmul.f32 %v2078_v53, %v137_v58  ;;  %v144_v62 = vmul.f32 %v2080_v60, %v132_v54  ;;  %vm150_vm9 = vweird.f32 %v2080_v60 }
 0x1fe   :  { %vm151_vm11 = vmor %vm149_vm10, %vm150_vm9 }
 0x1ff   :  { %v142_v0 = vsel %vm141_vm8, %v2078_v53, %v138_v61  ;;  %v145_v1 = vmul.f32 %v2080_v60, %v144_v62 }
 0x200   :  { %v153_v2 = vmul.f32 %v142_v0, %v119_v34 }
 0x201   :  { %v146_v4 = vmul.f32 0.5, %v145_v1 }
 0x202   :  { %v156_v5 = vmul.f32 %v155_v63, %v153_v2 }
 0x203   :  { %v147_v6 = vsub.f32 1.5, %v146_v4 }
 0x204   :  { %v2357_v7 = vadd.f32 %v158_v3, %v156_v5 }
 0x205   :  { %v148_v8 = vmul.f32 %v2080_v60, %v147_v6 }
 0x206   :  { %1910 = vmatmul.msk.f32.vlgmr.msra.gmra.mxu1 %vm103_vm4, %v2357_v7 }
 0x207   :  { %v152_v9 = vsel %vm151_vm11, %v2080_v60, %v148_v8 }
 0x208   :  { %v154_v10 = vmul.f32 %v152_v9, %v120_v39 }
 0x20a   :  { %v157_v11 = vmul.f32 %v155_v63, %v154_v10 }
 0x20c   :  { %v2361_v12 = vadd.f32 %v158_v3, %v157_v11 }
 0x20e   :  { %1911 = vmatmul.msk.f32.gmra.mxu1 %vm103_vm4, %v2361_v12 }
 0x283   :  { %v193_v14 = vpop.f32.mrf.mxu1 }
 0x284   :  { %v194_v15 = vadd.f32 %v2071_v13, %v193_v14 }
 0x286   :  { %200 = vrot.lane.b32.xlu0 %v194_v15, %s2202_s13 }
 0x28b   :  { %v196_v16 = vpop.f32.mrf.mxu1 }
 0x28c   :  { %v2369_v17 = vadd.f32 %v2071_v13, %v196_v16 }
 0x28e   :  { %228 = vrot.lane.b32.xlu1 %v2369_v17, %s2202_s13  ;;  %v2388_v24 = vpack.i.bf16 %v2369_v17, %v194_v15 }
 0x296   :  { %330 = vrot.lane.b32.xlu1 %v194_v15, %s2203_s14 }
 0x29e   :  { %358 = vrot.lane.b32.xlu1 %v2369_v17, %s2203_s14 }
 0x2a6   :  { %328 = vrot.lane.b32.xlu1 %v194_v15, %s2204_s15 }
 0x2ae   :  { %460 = vrot.lane.b32.xlu1 %v194_v15, %s2205_s16 }
 0x2b6   :  { %590 = vrot.lane.b32.xlu1 %v194_v15, %s2206_s17 }
 0x2be   :  { %588 = vrot.lane.b32.xlu1 %v194_v15, %s2207_s18 }
 0x2f8   :  { %v201_v18 = vpop.permute.xlu0 %200 }
 0x2f9   :  { %1912 = vmatpush.xpose.msk.msra.mxu3 %vm202_vm12, %v201_v18 }
 0x2fc   :  { %1913 = vmatmul.msk.f32.vlgmr.msra.gmra.mxu3 %vm202_vm12, %v194_v15 }
 0x300   :  { %v229_v19 = vpop.permute.xlu1 %228 }
 0x301   :  { %1914 = vmatpush.xpose.msk.msrb.mxu3 %vm202_vm12, %v229_v19 }
 0x304   :  { %1915 = vmatmul.msk.f32.vlgmr.msrb.gmra.mxu3 %vm202_vm12, %v2369_v17 }
 0x308   :  { %v331_v26 = vpop.permute.xlu1 %330 }
 0x310   :  { %v359_v36 = vpop.permute.xlu1 %358 }
 0x318   :  { %v329_v52 = vpop.permute.xlu1 %328 }
 0x320   :  { %v461_v57 = vpop.permute.xlu1 %460 }
 0x328   :  { %v591_v61 = vpop.permute.xlu1 %590 }
 0x330   :  { %v589_v62 = vpop.permute.xlu1 %588 }
 0x37f   :  { %v224_v20 = vpop.f32.mrf.mxu3 }
 0x380   :  { %v254_v21 = vsel %vm202_vm12, %v224_v20, -inf }
 0x381   :  { %255 = vmax.xlane.f32.xlu2 %v254_v21 }
 0x387   :  { %v251_v22 = vpop.f32.mrf.mxu3 }
 0x388   :  { %v257_v23 = vsel %vm202_vm12, %v251_v22, -inf }
 0x389   :  { %258 = vmax.xlane.f32.xlu0 %v257_v23 }
 0x399   :  { %2017 = vrot.lane.b32.xlu2 %v2388_v24, %s2208_s19 }
 0x39d   :  { %458 = vrot.lane.b32.xlu0 %v194_v15, %s2209_s20 }
 0x3a1   :  { %356 = vrot.lane.b32.xlu2 %v2369_v17, %s2204_s15 }
 0x3a5   :  { %618 = vrot.lane.b32.xlu0 %v2369_v17, %s2206_s17 }
 0x3a9   :  { %488 = vrot.lane.b32.xlu2 %v2369_v17, %s2205_s16 }
 0x3f4   :  { %v256_v25 = vpop.xlane.xlu2 %255 }
 0x3f5   :  { %v260_v27 = vsub.f32 %v224_v20, %v256_v25 }
 0x3f7   :  { %v262_v28 = vmul.f32 1.442695, %v260_v27 }
 0x3f9   :  { %2081 = vpow2.f32 %v262_v28 }
 0x3fc   :  { %v2018_v29 = vpop.permute.xlu2 %2017  ;;  %v259_v30 = vpop.xlane.xlu0 %258 }
 0x3fd   :  { %v2020_v32 = vunpack.i.h.bf16 %v2018_v29  ;;  %v261_v33 = vsub.f32 %v251_v22, %v259_v30  ;;  %v2019_v34 = vunpack.i.l.bf16 %v2018_v29 }
 0x3ff   :  { %v2082_v35 = vpop.eup %2081  ;;  %v264_v37 = vmul.f32 1.442695, %v261_v33  ;;  %297 = vmatpush.msra.mxu2 %v2019_v34  ;;  %323 = vmatpush.msra.mxu3 %v2020_v32 }
 0x400   :  { %v266_v38 = vsel %vm202_vm12, %v2082_v35, 0.0 }
 0x401   :  { %1918 = vmatpush.xpose.msk.msrb.mxu2 %vm202_vm12, %v331_v26  ;;  %1920 = vmatpush.xpose.msk.msrb.mxu3 %vm202_vm12, %v359_v36  ;;  %2083 = vpow2.f32 %v264_v37 }
 0x402   :  { %267 = vadd.xlane.f32.xlu2 %v266_v38 }
 0x404   :  { %v357_v39 = vpop.permute.xlu2 %356 }
 0x407   :  { %v2084_v40 = vpop.eup %2083 }
 0x408   :  { %v269_v41 = vsel %vm202_vm12, %v2084_v40, 0.0 }
 0x40a   :  { %270 = vadd.xlane.f32.xlu2 %v269_v41 }
 0x40c   :  { %v489_v48 = vpop.permute.xlu2 %488 }
 0x40d   :  { %1926 = vmatpush.xpose.msk.msrb.mxu0 %vm202_vm12, %v489_v48 }
 0x40f   :  { %v459_v49 = vpop.permute.xlu0 %458 }
 0x417   :  { %v619_v50 = vpop.permute.xlu0 %618 }
 0x418   :  { %1932 = vmatpush.xpose.msk.msra.mxu0 %vm202_vm12, %v619_v50 }
 0x422   :  { %486 = vrot.lane.b32.xlu2 %v2369_v17, %s2209_s20 }
 0x42a   :  { %616 = vrot.lane.b32.xlu2 %v2369_v17, %s2207_s18 }
 0x475   :  { %v268_v51 = vpop.xlane.xlu2 %267 }
 0x476   :  { %2085 = vrcp.f32 %v268_v51 }
 0x47c   :  { %v2086_v53 = vpop.eup %2085 }
 0x47d   :  { %v271_v54 = vpop.xlane.xlu2 %270  ;;  %v274_v55 = vmul.f32 %v2086_v53, %v2082_v35 }
 0x47e   :  { %2087 = vrcp.f32 %v271_v54 }
 0x47f   :  { %1916 = vmatmul.msk.f32.vlgmr.msra.gmra.mxu2 %vm202_vm12, %v274_v55 }
 0x484   :  { %v2088_v56 = vpop.eup %2087 }
 0x485   :  { %v275_v58 = vmul.f32 %v2088_v56, %v2084_v40  ;;  %v487_v59 = vpop.permute.xlu2 %486 }
 0x486   :  { %1927 = vmatmul.msk.f32.vlgmr.msrb.gmra.mxu0 %vm202_vm12, %v487_v59 }
 0x487   :  { %1917 = vmatmul.msk.f32.vlgmr.msra.gmra.mxu3 %vm202_vm12, %v275_v58  ;;  %1919 = vmatmul.msk.f32.vlgmr.msrb.gmra.mxu2 %vm202_vm12, %v329_v52 }
 0x488   :  { %1924 = vmatpush.xpose.msk.msra.mxu3 %vm202_vm12, %v461_v57 }
 0x48d   :  { %v617_v60 = vpop.permute.xlu2 %616 }
 0x48e   :  { %1933 = vmatmul.msk.f32.vlgmr.msra.gmra.mxu0 %vm202_vm12, %v617_v60 }
 0x48f   :  { %1921 = vmatmul.msk.f32.vlgmr.msrb.gmra.mxu3 %vm202_vm12, %v357_v39 }
 0x490   :  { %1930 = vmatpush.xpose.msk.msrb.mxu3 %vm202_vm12, %v591_v61 }
 0x497   :  { %1925 = vmatmul.msk.f32.vlgmr.msra.gmra.mxu3 %vm202_vm12, %v459_v49 }
 0x49f   :  { %1931 = vmatmul.msk.f32.vlgmr.msrb.gmra.mxu3 %vm202_vm12, %v589_v62 }
 0x502   :  { %v2419_v63 = vpop.f32.mrf.mxu2 }
 0x503   :  { %v511_v3 = vpop.f32.mrf.mxu0 }
 0x504   :  { %v517_v6 = vsel %vm202_vm12, %v511_v3, -inf }
 0x50a   :  { %v2421_v0 = vpop.f32.mrf.mxu3  ;;  %v353_v1 = vpop.f32.mrf.mxu2 }
 0x50b   :  { %v384_v2 = vsel %vm202_vm12, %v353_v1, -inf  ;;  %v641_v10 = vpop.f32.mrf.mxu0 }
 0x50c   :  { %385 = vmax.xlane.f32.xlu1 %v384_v2  ;;  %v647_v14 = vsel %vm202_vm12, %v641_v10, -inf }
 0x512   :  { %v381_v4 = vpop.f32.mrf.mxu3 }
 0x513   :  { %v387_v5 = vsel %vm202_vm12, %v381_v4, -inf }
 0x514   :  { %388 = vmax.xlane.f32.xlu0 %v387_v5  ;;  %518 = vmax.xlane.f32.xlu1 %v517_v6 }
 0x51a   :  { %v483_v8 = vpop.f32.mrf.mxu3 }
 0x51b   :  { %v514_v9 = vsel %vm202_vm12, %v483_v8, -inf }
 0x51c   :  { %515 = vmax.xlane.f32.xlu2 %v514_v9 }
 0x522   :  { %v613_v11 = vpop.f32.mrf.mxu3 }
 0x523   :  { %v644_v13 = vsel %vm202_vm12, %v613_v11, -inf }
 0x524   :  { %645 = vmax.xlane.f32.xlu0 %v644_v13  ;;  %648 = vmax.xlane.f32.xlu2 %v647_v14 }
 0x57f   :  { %v386_v15 = vpop.xlane.xlu1 %385 }
 0x580   :  { %v390_v16 = vsub.f32 %v353_v1, %v386_v15 }
 0x582   :  { %v392_v17 = vmul.f32 1.442695, %v390_v16 }
 0x584   :  { %2089 = vpow2.f32 %v392_v17 }
 0x587   :  { %v519_v18 = vpop.xlane.xlu1 %518  ;;  %v389_v19 = vpop.xlane.xlu0 %388 }
 0x588   :  { %v521_v20 = vsub.f32 %v511_v3, %v519_v18  ;;  %v391_v23 = vsub.f32 %v381_v4, %v389_v19 }
 0x58a   :  { %v2090_v21 = vpop.eup %2089  ;;  %v524_v22 = vmul.f32 1.442695, %v521_v20  ;;  %v394_v26 = vmul.f32 1.442695, %v391_v23 }
 0x58b   :  { %v396_v25 = vsel %vm202_vm12, %v2090_v21, 0.0 }
 0x58c   :  { %2091 = vpow2.f32 %v524_v22  ;;  %397 = vadd.xlane.f32.xlu1 %v396_v25 }
 0x58d   :  { %2093 = vpow2.f32 %v394_v26 }
 0x58f   :  { %v516_v27 = vpop.xlane.xlu2 %515 }
 0x590   :  { %v520_v34 = vsub.f32 %v483_v8, %v516_v27 }
 0x592   :  { %v2092_v28 = vpop.eup %2091  ;;  %v522_v37 = vmul.f32 1.442695, %v520_v34 }
 0x593   :  { %v529_v29 = vsel %vm202_vm12, %v2092_v28, 0.0  ;;  %v2094_v32 = vpop.eup %2093 }
 0x594   :  { %530 = vadd.xlane.f32.xlu0 %v529_v29  ;;  %v399_v36 = vsel %vm202_vm12, %v2094_v32, 0.0 }
 0x597   :  { %v649_v30 = vpop.xlane.xlu2 %648  ;;  %v646_v38 = vpop.xlane.xlu0 %645 }
 0x598   :  { %v651_v33 = vsub.f32 %v641_v10, %v649_v30  ;;  %v650_v40 = vsub.f32 %v613_v11, %v646_v38 }
 0x59a   :  { %v654_v35 = vmul.f32 1.442695, %v651_v33  ;;  %v652_v48 = vmul.f32 1.442695, %v650_v40 }
 0x59c   :  { %2095 = vpow2.f32 %v654_v35  ;;  %400 = vadd.xlane.f32.xlu0 %v399_v36 }
 0x59d   :  { %2097 = vpow2.f32 %v522_v37 }
 0x59e   :  { %2099 = vpow2.f32 %v652_v48 }
 0x5a2   :  { %v2096_v39 = vpop.eup %2095 }
 0x5a3   :  { %v659_v41 = vsel %vm202_vm12, %v2096_v39, 0.0  ;;  %v2098_v49 = vpop.eup %2097 }
 0x5a4   :  { %660 = vadd.xlane.f32.xlu2 %v659_v41  ;;  %v526_v50 = vsel %vm202_vm12, %v2098_v49, 0.0  ;;  %v2100_v51 = vpop.eup %2099 }
 0x5a5   :  { %2022 = vrot.lane.b32.xlu1 %v2388_v24, %s2210_s21  ;;  %v656_v52 = vsel %vm202_vm12, %v2100_v51, 0.0 }
 0x5ac   :  { %527 = vadd.xlane.f32.xlu2 %v526_v50 }
 0x5ad   :  { %2037 = vrot.lane.b32.xlu1 %v2036_v46, %s2213_s1 }
 0x5b0   :  { %2027 = vrot.lane.b32.xlu0 %v2388_v24, %s2211_s0 }
 0x5b4   :  { %657 = vadd.xlane.f32.xlu2 %v656_v52 }
 0x5b5   :  { %2042 = vrot.lane.b32.xlu1 %v2041_v47, %s2213_s1 }
 0x5cc   :  { %2032 = vrot.lane.b32.xlu2 %v2388_v24, %s2212_s22 }
 0x5ff   :  { %v398_v54 = vpop.xlane.xlu1 %397 }
 0x600   :  { %2101 = vrcp.f32 %v398_v54 }
 0x606   :  { %v2102_v56 = vpop.eup %2101 }
 0x607   :  { %v531_v53 = vpop.xlane.xlu0 %530  ;;  %v404_v1 = vmul.f32 %v2102_v56, %v2090_v21 }
 0x60f   :  { %v401_v55 = vpop.xlane.xlu0 %400 }
 0x610   :  { %2103 = vrcp.f32 %v401_v55 }
 0x611   :  { %2105 = vrcp.f32 %v531_v53 }
 0x616   :  { %v2104_v57 = vpop.eup %2103 }
 0x617   :  { %v2023_v58 = vpop.permute.xlu1 %2022  ;;  %v661_v59 = vpop.xlane.xlu2 %660  ;;  %v405_v62 = vmul.f32 %v2104_v57, %v2094_v32 }
 0x618   :  { %v2025_v60 = vunpack.i.h.bf16 %v2023_v58  ;;  %v2024_v61 = vunpack.i.l.bf16 %v2023_v58  ;;  %v2106_v2 = vpop.eup %2105 }
 0x619   :  { %v535_v6 = vmul.f32 %v2106_v2, %v2092_v28 }
 0x61a   :  { %427 = vmatpush.msrb.mxu1 %v2024_v61  ;;  %453 = vmatpush.msra.mxu2 %v2025_v60 }
 0x61b   :  { %1922 = vmatmul.msk.f32.vlgmr.msrb.gmra.mxu1 %vm202_vm12, %v404_v1  ;;  %1923 = vmatmul.msk.f32.vlgmr.msra.gmra.mxu2 %vm202_vm12, %v405_v62  ;;  %v850_v62 = vld [vmem:[%s2793_s6 + $0x10] sm:$0xff]  ;;  %v849_v1 = vld [vmem:[%s2793_s6 + $0x8] sm:$0xff] }
 0x61f   :  { %v528_v24 = vpop.xlane.xlu2 %527  ;;  %v2038_v19 = vpop.permute.xlu1 %2037 }
 0x620   :  { %2107 = vrcp.f32 %v528_v24  ;;  %v2040_v20 = vunpack.i.h.bf16 %v2038_v19  ;;  %v2039_v21 = vunpack.i.l.bf16 %v2038_v19  ;;  %v848_v24 = vld [vmem:[%s2793_s6] sm:$0xff] }
 0x621   :  { %2109 = vrcp.f32 %v661_v59 }
 0x622   :  { %v2028_v3 = vpop.permute.xlu0 %2027  ;;  %785 = vmatpush.msra.mxu3 %v2039_v21 }
 0x623   :  { %v2030_v4 = vunpack.i.h.bf16 %v2028_v3  ;;  %v2029_v5 = vunpack.i.l.bf16 %v2028_v3 }
 0x624   :  { %786 = vmatpush.msra.mxu3 %v2040_v20 }
 0x625   :  { %557 = vmatpush.msra.mxu1 %v2029_v5  ;;  %583 = vmatpush.msrb.mxu2 %v2030_v4 }
 0x626   :  { %v2108_v8 = vpop.eup %2107  ;;  %1929 = vmatmul.msk.f32.vlgmr.msrb.gmra.mxu2 %vm202_vm12, %v535_v6 }
 0x627   :  { %v534_v9 = vmul.f32 %v2108_v8, %v2098_v49  ;;  %v658_v10 = vpop.xlane.xlu2 %657  ;;  %v2110_v42 = vpop.eup %2109 }
 0x628   :  { %2111 = vrcp.f32 %v658_v10  ;;  %v665_v14 = vmul.f32 %v2110_v42, %v2096_v39  ;;  %v2043_v22 = vpop.permute.xlu1 %2042 }
 0x629   :  { %1928 = vmatmul.msk.f32.vlgmr.msra.gmra.mxu1 %vm202_vm12, %v534_v9  ;;  %v2045_v23 = vunpack.i.h.bf16 %v2043_v22  ;;  %v2044_v25 = vunpack.i.l.bf16 %v2043_v22 }
 0x62b   :  { %787 = vmatpush.msra.mxu3 %v2044_v25 }
 0x62d   :  { %788 = vmatpush.msra.mxu3 %v2045_v23 }
 0x62e   :  { %v2112_v43 = vpop.eup %2111 }
 0x62f   :  { %v2033_v46 = vpop.permute.xlu2 %2032  ;;  %v664_v15 = vmul.f32 %v2112_v43, %v2100_v51 }
 0x630   :  { %v2035_v11 = vunpack.i.h.bf16 %v2033_v46  ;;  %v2034_v13 = vunpack.i.l.bf16 %v2033_v46 }
 0x632   :  { %687 = vmatpush.msrb.mxu1 %v2034_v13  ;;  %713 = vmatpush.msra.mxu2 %v2035_v11 }
 0x633   :  { %1934 = vmatmul.msk.f32.vlgmr.msrb.gmra.mxu1 %vm202_vm12, %v664_v15  ;;  %1935 = vmatmul.msk.f32.vlgmr.msra.gmra.mxu2 %vm202_vm12, %v665_v14 }
 0x698   :  { %v429_v16 = vpop.f32.mrf.mxu1 }
 0x699   :  { %720 = vrot.lane.b32.xlu0 %v429_v16, %s2214_s2 }
 0x69e   :  { %v455_v44 = vpop.f32.mrf.mxu2 }
 0x69f   :  { %722 = vrot.lane.b32.xlu2 %v455_v44, %s2214_s2 }
 0x6a6   :  { %v559_v45 = vpop.f32.mrf.mxu1 }
 0x6a7   :  { %728 = vrot.lane.b32.xlu0 %v559_v45, %s2802_s23 }
 0x6a9   :  { %v585_v47 = vpop.f32.mrf.mxu2 }
 0x6af   :  { %730 = vrot.lane.b32.xlu0 %v585_v47, %s2802_s23 }
 0x6b0   :  { %v689_v17 = vpop.f32.mrf.mxu1 }
 0x6b1   :  { %736 = vrot.lane.b32.xlu1 %v689_v17, %s2800_s24 }
 0x6b6   :  { %v715_v18 = vpop.f32.mrf.mxu2 }
 0x6b9   :  { %738 = vrot.lane.b32.xlu1 %v715_v18, %s2800_s24 }
 0x6f9   :  { %v723_v33 = vpop.permute.xlu2 %722 }
 0x6fa   :  { %v743_v35 = vsel %vm202_vm12, %v2421_v0, %v723_v33  ;;  %v905_v33 = vld [vmem:[%s2795_s8 + $0x10] sm:$0xff] }
 0x70b   :  { %v721_v26 = vpop.permute.xlu0 %720 }
 0x70c   :  { %v742_v28 = vsel %vm202_vm12, %v2419_v63, %v721_v26  ;;  %v2474_v63 = vld [vmem:[%s2796_s9] sm:$0xff] }
 0x70d   :  { %v750_v39 = vperm.slane %v2474_v63, 0  ;;  %v842_v15 = vperm.slane %v2474_v63, 1  ;;  %v845_v47 = vperm.slane %v2474_v63, 2 }
 0x719   :  { %v729_v27 = vpop.permute.xlu0 %728 }
 0x71a   :  { %v745_v29 = vsel %vm744_vm13, %v742_v28, %v729_v27  ;;  %v910_v27 = vld [vmem:[%s2795_s8 + $0x38] sm:$0xff]  ;;  %v909_v28 = vld [vmem:[%s2795_s8 + $0x30] sm:$0xff] }
 0x71b   :  { %927 = vmatpush.msra.mxu1 %v910_v27 }
 0x71d   :  { %928 = vmatpush.msra.mxu1 %v909_v28 }
 0x721   :  { %v731_v34 = vpop.permute.xlu0 %730 }
 0x722   :  { %v746_v36 = vsel %vm744_vm13, %v743_v35, %v731_v34  ;;  %v904_v34 = vld [vmem:[%s2795_s8 + $0x8] sm:$0xff]  ;;  %v903_v35 = vld [vmem:[%s2795_s8] sm:$0xff] }
 0x723   :  { %v737_v30 = vpop.permute.xlu1 %736 }
 0x724   :  { %v748_v32 = vsel %vm747_vm14, %v745_v29, %v737_v30  ;;  %v908_v29 = vld [vmem:[%s2795_s8 + $0x28] sm:$0xff]  ;;  %v907_v30 = vld [vmem:[%s2795_s8 + $0x20] sm:$0xff] }
 0x725   :  { %1936 = vmatmul.msk.f32.vlgmr.msra.gmra.mxu3 %vm103_vm4, %v748_v32  ;;  %929 = vmatpush.msra.mxu1 %v908_v29  ;;  %v906_v32 = vld [vmem:[%s2795_s8 + $0x18] sm:$0xff] }
 0x727   :  { %930 = vmatpush.msra.mxu1 %v907_v30 }
 0x729   :  { %931 = vmatpush.msra.mxu1 %v906_v32 }
 0x72b   :  { %v739_v37 = vpop.permute.xlu1 %738  ;;  %932 = vmatpush.msra.mxu1 %v905_v33 }
 0x72c   :  { %v749_v38 = vsel %vm747_vm14, %v746_v36, %v739_v37  ;;  %v2072_v36 = vld [vmem:[%s2794_s7] ss:$0 sm:$0xff] }
 0x72d   :  { %1937 = vmatmul.msk.f32.gmra.mxu3 %vm103_vm4, %v749_v38  ;;  %933 = vmatpush.msra.mxu1 %v904_v34 }
 0x72f   :  { %934 = vmatpush.msra.mxu1 %v903_v35 }
 0x7a8   :  { %v790_v40 = vpop.f32.mrf.mxu3 }
 0x7a9   :  { %v791_v41 = vadd.f32 %v790_v40, %v750_v39 }
 0x7ab   :  { %v796_v48 = vadd.f32 %v791_v41, %v2357_v7 }
 0x7ad   :  { %v798_v0 = vsel %vm103_vm4, %v796_v48, 0.0 }
 0x7ae   :  { %799 = vadd.xlane.f32.xlu2 %v798_v0 }
 0x7b0   :  { %v793_v49 = vpop.f32.mrf.mxu3 }
 0x7b1   :  { %v794_v50 = vadd.f32 %v793_v49, %v750_v39 }
 0x7b3   :  { %v797_v51 = vadd.f32 %v794_v50, %v2361_v12  ;;  %v851_v12 = vld [vmem:[%s2793_s6 + $0x18] sm:$0xff] }
 0x7b4   :  { %874 = vmatpush.msrb.mxu0 %v851_v12 }
 0x7b5   :  { %v801_v52 = vsel %vm103_vm4, %v797_v51, 0.0 }
 0x7b6   :  { %802 = vadd.xlane.f32.xlu0 %v801_v52  ;;  %875 = vmatpush.msrb.mxu0 %v850_v62  ;;  %v911_v62 = vperm.slane %v2474_v63, 3 }
 0x7b8   :  { %876 = vmatpush.msrb.mxu0 %v849_v1 }
 0x7ba   :  { %877 = vmatpush.msrb.mxu0 %v848_v24 }
 0x821   :  { %v800_v53 = vpop.xlane.xlu2 %799 }
 0x822   :  { %v804_v54 = vmul.f32 %v800_v53, %v2318_v31 }
 0x824   :  { %v806_v55 = vsub.f32 %v796_v48, %v804_v54 }
 0x826   :  { %v808_v56 = vmul.f32 %v806_v55, %v806_v55 }
 0x828   :  { %v810_v57 = vsel %vm103_vm4, %v808_v56, 0.0 }
 0x829   :  { %811 = vadd.xlane.f32.xlu1 %v810_v57  ;;  %v803_v58 = vpop.xlane.xlu0 %802 }
 0x82a   :  { %v805_v7 = vmul.f32 %v803_v58, %v2318_v31 }
 0x82c   :  { %v807_v59 = vsub.f32 %v797_v51, %v805_v7 }
 0x82e   :  { %v809_v60 = vmul.f32 %v807_v59, %v807_v59 }
 0x830   :  { %v813_v61 = vsel %vm103_vm4, %v809_v60, 0.0 }
 0x831   :  { %814 = vadd.xlane.f32.xlu2 %v813_v61 }
 0x89c   :  { %v812_v2 = vpop.xlane.xlu1 %811 }
 0x89d   :  { %v816_v3 = vmul.f32 %v812_v2, %v2318_v31 }
 0x89f   :  { %v818_v4 = vadd.f32 1e-12, %v816_v3 }
 0x8a1   :  { %2113 = vrsqrt.f32 %v818_v4  ;;  %vm826_vm0 = vweird.f32 %v818_v4 }
 0x8a4   :  { %v815_v5 = vpop.xlane.xlu2 %814 }
 0x8a5   :  { %v817_v6 = vmul.f32 %v815_v5, %v2318_v31 }
 0x8a7   :  { %v2114_v8 = vpop.eup %2113  ;;  %v819_v9 = vadd.f32 1e-12, %v817_v6 }
 0x8a8   :  { %v821_v10 = vmul.f32 %v2114_v8, %v818_v4  ;;  %vm827_vm15 = vweird.f32 %v2114_v8 }
 0x8a9   :  { %2115 = vrsqrt.f32 %v819_v9  ;;  %vm828_vm1 = vmor %vm826_vm0, %vm827_vm15  ;;  %vm836_vm3 = vweird.f32 %v819_v9 }
 0x8aa   :  { %v822_v42 = vmul.f32 %v2114_v8, %v821_v10 }
 0x8ac   :  { %v823_v43 = vmul.f32 0.5, %v822_v42 }
 0x8ae   :  { %v824_v46 = vsub.f32 1.5, %v823_v43 }
 0x8af   :  { %v2116_v11 = vpop.eup %2115 }
 0x8b0   :  { %v825_v13 = vmul.f32 %v2114_v8, %v824_v46  ;;  %v831_v14 = vmul.f32 %v2116_v11, %v819_v9  ;;  %vm837_vm2 = vweird.f32 %v2116_v11 }
 0x8b1   :  { %vm838_vm5 = vmor %vm836_vm3, %vm837_vm2 }
 0x8b2   :  { %v829_v16 = vsel %vm828_vm1, %v2114_v8, %v825_v13  ;;  %v832_v44 = vmul.f32 %v2116_v11, %v831_v14 }
 0x8b3   :  { %v840_v45 = vmul.f32 %v829_v16, %v806_v55 }
 0x8b4   :  { %v833_v17 = vmul.f32 0.5, %v832_v44  ;;  %v2542_v44 = vld [vmem:[%s2791_s4 + $0x38] sm:$0xff] }
 0x8b5   :  { %v843_v18 = vmul.f32 %v842_v15, %v840_v45  ;;  %1024 = vmatpush.msrb.mxu2 %v2542_v44  ;;  %v2548_v45 = vld [vmem:[%s2791_s4 + $0x30] sm:$0xff] }
 0x8b6   :  { %v834_v19 = vsub.f32 1.5, %v833_v17  ;;  %v2560_v17 = vld [vmem:[%s2791_s4 + $0x20] sm:$0xff] }
 0x8b7   :  { %v846_v20 = vadd.f32 %v845_v47, %v843_v18  ;;  %1025 = vmatpush.msrb.mxu2 %v2548_v45  ;;  %v2061_v18 = vpack.i.bf16 %v2548_v45, %v2542_v44 }
 0x8b8   :  { %v835_v21 = vmul.f32 %v2116_v11, %v834_v19 }
 0x8b9   :  { %1938 = vmatmul.msk.f32.vlgmr.msrb.gmra.mxu0 %vm103_vm4, %v846_v20 }
 0x8ba   :  { %v839_v22 = vsel %vm838_vm5, %v2116_v11, %v835_v21 }
 0x8bb   :  { %v841_v23 = vmul.f32 %v839_v22, %v807_v59 }
 0x8bd   :  { %v844_v25 = vmul.f32 %v842_v15, %v841_v23 }
 0x8bf   :  { %v847_v26 = vadd.f32 %v845_v47, %v844_v25  ;;  %v2554_v47 = vld [vmem:[%s2791_s4 + $0x28] sm:$0xff] }
 0x8c0   :  { %1026 = vmatpush.msrb.mxu2 %v2554_v47  ;;  %v2066_v19 = vpack.i.bf16 %v2560_v17, %v2554_v47 }
 0x8c1   :  { %1939 = vmatmul.msk.f32.gmra.mxu0 %vm103_vm4, %v847_v26 }
 0x8c2   :  { %1027 = vmatpush.msrb.mxu2 %v2560_v17 }
 0x936   :  { %v879_v37 = vpop.f32.mrf.mxu0 }
 0x937   :  { %v880_v38 = vadd.f32 %v2072_v36, %v879_v37 }
 0x939   :  { %v887_v39 = vmul.f32 0.044715, %v880_v38  ;;  %v885_v57 = vmul.f32 0.5, %v880_v38 }
 0x93b   :  { %v889_v40 = vmul.f32 %v887_v39, %v880_v38 }
 0x93d   :  { %v891_v41 = vmul.f32 %v889_v40, %v880_v38  ;;  %v991_v40 = vperm.slane %v2474_v63, 5 }
 0x93e   :  { %v882_v48 = vpop.f32.mrf.mxu0 }
 0x93f   :  { %v893_v0 = vadd.f32 %v891_v41, %v880_v38  ;;  %v883_v49 = vadd.f32 %v2072_v36, %v882_v48  ;;  %v988_v36 = vperm.slane %v2474_v63, 4  ;;  %v2073_v63 = vld [vmem:[%s2792_s5 + $0x1] ss:$0 sm:$0xff]  ;;  %s2804_s5 = smov 16  }
 0x941   :  { %v895_v50 = vmul.f32 0.7978846, %v893_v0  ;;  %v888_v51 = vmul.f32 0.044715, %v883_v49  ;;  %v886_v60 = vmul.f32 0.5, %v883_v49 }
 0x943   :  { %2117 = vtanh.f32 %v895_v50  ;;  %v890_v52 = vmul.f32 %v888_v51, %v883_v49 }
 0x945   :  { %v892_v53 = vmul.f32 %v890_v52, %v883_v49 }
 0x947   :  { %v894_v54 = vadd.f32 %v892_v53, %v883_v49 }
 0x949   :  { %v2118_v55 = vpop.eup %2117  ;;  %v896_v56 = vmul.f32 0.7978846, %v894_v54 }
 0x94a   :  { %v899_v58 = vadd.f32 1.0, %v2118_v55 }
 0x94b   :  { %2119 = vtanh.f32 %v896_v56 }
 0x94c   :  { %v901_v7 = vmul.f32 %v899_v58, %v885_v57 }
 0x94e   :  { %1940 = vmatmul.msk.f32.vlgmr.msra.gmra.mxu1 %vm912_vm6, %v901_v7 }
 0x951   :  { %v2120_v59 = vpop.eup %2119 }
 0x952   :  { %v900_v61 = vadd.f32 1.0, %v2120_v59 }
 0x954   :  { %v902_v12 = vmul.f32 %v900_v61, %v886_v60 }
 0x956   :  { %1941 = vmatmul.msk.f32.gmra.mxu1 %vm912_vm6, %v902_v12 }
 0x9cb   :  { %v936_v1 = vpop.f32.mrf.mxu1 }
 0x9cc   :  { %v937_v24 = vadd.f32 %v936_v1, %v911_v62 }
 0x9ce   :  { %v942_v2 = vadd.f32 %v937_v24, %v846_v20 }
 0x9d0   :  { %v944_v3 = vsel %vm103_vm4, %v942_v2, 0.0 }
 0x9d1   :  { %945 = vadd.xlane.f32.xlu0 %v944_v3 }
 0x9d3   :  { %v939_v4 = vpop.f32.mrf.mxu1 }
 0x9d4   :  { %v940_v5 = vadd.f32 %v939_v4, %v911_v62 }
 0x9d6   :  { %v943_v6 = vadd.f32 %v940_v5, %v847_v26 }
 0x9d8   :  { %v947_v8 = vsel %vm103_vm4, %v943_v6, 0.0 }
 0x9d9   :  { %948 = vadd.xlane.f32.xlu1 %v947_v8 }
 0xa44   :  { %v946_v9 = vpop.xlane.xlu0 %945 }
 0xa45   :  { %v950_v10 = vmul.f32 %v946_v9, %v2318_v31 }
 0xa47   :  { %v952_v42 = vsub.f32 %v942_v2, %v950_v10 }
 0xa49   :  { %v954_v43 = vmul.f32 %v952_v42, %v952_v42 }
 0xa4b   :  { %v956_v46 = vsel %vm103_vm4, %v954_v43, 0.0 }
 0xa4c   :  { %v949_v11 = vpop.xlane.xlu1 %948  ;;  %957 = vadd.xlane.f32.xlu2 %v956_v46 }
 0xa4d   :  { %v951_v13 = vmul.f32 %v949_v11, %v2318_v31 }
 0xa4f   :  { %v953_v14 = vsub.f32 %v943_v6, %v951_v13 }
 0xa51   :  { %v955_v15 = vmul.f32 %v953_v14, %v953_v14 }
 0xa53   :  { %v959_v16 = vsel %vm103_vm4, %v955_v15, 0.0 }
 0xa54   :  { %960 = vadd.xlane.f32.xlu0 %v959_v16 }
 0xabf   :  { %v958_v20 = vpop.xlane.xlu2 %957 }
 0xac0   :  { %v962_v21 = vmul.f32 %v958_v20, %v2318_v31 }
 0xac2   :  { %v964_v22 = vadd.f32 1e-12, %v962_v21 }
 0xac4   :  { %2121 = vrsqrt.f32 %v964_v22  ;;  %vm972_vm8 = vweird.f32 %v964_v22 }
 0xac7   :  { %v961_v23 = vpop.xlane.xlu0 %960 }
 0xac8   :  { %v963_v25 = vmul.f32 %v961_v23, %v2318_v31 }
 0xaca   :  { %v2122_v26 = vpop.eup %2121  ;;  %v965_v27 = vadd.f32 1e-12, %v963_v25 }
 0xacb   :  { %v967_v28 = vmul.f32 %v2122_v26, %v964_v22  ;;  %vm973_vm7 = vweird.f32 %v2122_v26 }
 0xacc   :  { %2123 = vrsqrt.f32 %v965_v27  ;;  %vm974_vm9 = vmor %vm972_vm8, %vm973_vm7  ;;  %vm982_vm11 = vweird.f32 %v965_v27 }
 0xacd   :  { %v968_v29 = vmul.f32 %v2122_v26, %v967_v28 }
 0xacf   :  { %v969_v30 = vmul.f32 0.5, %v968_v29 }
 0xad1   :  { %v970_v32 = vsub.f32 1.5, %v969_v30 }
 0xad2   :  { %v2124_v33 = vpop.eup %2123 }
 0xad3   :  { %v971_v34 = vmul.f32 %v2122_v26, %v970_v32  ;;  %v977_v35 = vmul.f32 %v2124_v33, %v965_v27  ;;  %vm983_vm10 = vweird.f32 %v2124_v33 }
 0xad4   :  { %vm984_vm15 = vmor %vm982_vm11, %vm983_vm10  ;;  %vm1832_vm10 = vcmask 1040384  }
 0xad5   :  { %v975_v37 = vsel %vm974_vm9, %v2122_v26, %v971_v34  ;;  %v978_v38 = vmul.f32 %v2124_v33, %v977_v35 }
 0xad6   :  { %v986_v39 = vmul.f32 %v975_v37, %v952_v42 }
 0xad7   :  { %v979_v41 = vmul.f32 0.5, %v978_v38 }
 0xad8   :  { %v989_v48 = vmul.f32 %v988_v36, %v986_v39 }
 0xad9   :  { %v980_v0 = vsub.f32 1.5, %v979_v41 }
 0xada   :  { %v2571_v49 = vadd.f32 %v991_v40, %v989_v48 }
 0xadb   :  { %v981_v50 = vmul.f32 %v2124_v33, %v980_v0 }
 0xadc   :  { %1948 = vmatmul.msk.f32.vlgmr.msrb.gmra.mxu2 %vm103_vm4, %v2571_v49 }
 0xadd   :  { %v985_v51 = vsel %vm984_vm15, %v2124_v33, %v981_v50 }
 0xade   :  { %v987_v52 = vmul.f32 %v985_v51, %v953_v14 }
 0xae0   :  { %v990_v53 = vmul.f32 %v988_v36, %v987_v52 }
 0xae2   :  { %v2575_v54 = vadd.f32 %v991_v40, %v990_v53 }
 0xae4   :  { %1949 = vmatmul.msk.f32.gmra.mxu2 %vm103_vm4, %v2575_v54 }
 0xb5f   :  { %v1029_v55 = vpop.f32.mrf.mxu2 }
 0xb60   :  { %v2582_v56 = vadd.f32 %v2073_v63, %v1029_v55 }
 0xb62   :  { %1165 = vrot.lane.b32.xlu0 %v2582_v56, %s2203_s14  ;;  %1036 = vrot.lane.b32.xlu1 %v2582_v56, %s2202_s13 }
 0xb67   :  { %v1032_v57 = vpop.f32.mrf.mxu2 }
 0xb68   :  { %v2588_v58 = vadd.f32 %v2073_v63, %v1032_v57 }
 0xb6a   :  { %1163 = vrot.lane.b32.xlu1 %v2582_v56, %s2204_s15  ;;  %1193 = vrot.lane.b32.xlu0 %v2588_v58, %s2203_s14  ;;  %v2046_v27 = vpack.i.bf16 %v2588_v58, %v2582_v56 }
 0xb6b   :  { %1063 = vrot.lane.b32.xlu2 %v2588_v58, %s2202_s13  ;;  %s2805_s13 = smov 24  }
 0xb72   :  { %1191 = vrot.lane.b32.xlu1 %v2588_v58, %s2204_s15  ;;  %1293 = vrot.lane.b32.xlu0 %v2582_v56, %s2209_s20  ;;  %s2217_s15 = smov [#allocation3]  }
 0xb73   :  { %1295 = vrot.lane.b32.xlu2 %v2582_v56, %s2205_s16 }
 0xb7a   :  { %1425 = vrot.lane.b32.xlu1 %v2582_v56, %s2206_s17  ;;  %1321 = vrot.lane.b32.xlu0 %v2588_v58, %s2209_s20 }
 0xb7b   :  { %1323 = vrot.lane.b32.xlu2 %v2588_v58, %s2205_s16 }
 0xb82   :  { %1453 = vrot.lane.b32.xlu1 %v2588_v58, %s2206_s17  ;;  %1451 = vrot.lane.b32.xlu0 %v2588_v58, %s2207_s18  ;;  %s1896_s17 = sshll.u32 %s2799_s12, 4  ;;  %s1897_s17 = int_to_ptr.hbm [resolvable:$true] %s1896_s17 }
 0xb83   :  { %1423 = vrot.lane.b32.xlu2 %v2582_v56, %s2207_s18 }
 0xbc5   :  { %v1064_v7 = vpop.permute.xlu2 %1063 }
 0xbc6   :  { %1952 = vmatpush.xpose.msk.msra.mxu0 %vm202_vm12, %v1064_v7 }
 0xbc9   :  { %1953 = vmatmul.msk.f32.vlgmr.msra.gmra.mxu0 %vm202_vm12, %v2588_v58 }
 0xbcd   :  { %v1296_v59 = vpop.permute.xlu2 %1295 }
 0xbd4   :  { %v1037_v60 = vpop.permute.xlu1 %1036  ;;  %v1166_v61 = vpop.permute.xlu0 %1165 }
 0xbd5   :  { %1950 = vmatpush.xpose.msk.msrb.mxu3 %vm202_vm12, %v1037_v60  ;;  %1956 = vmatpush.xpose.msk.msrb.mxu0 %vm202_vm12, %v1166_v61  ;;  %v1324_v1 = vpop.permute.xlu2 %1323 }
 0xbd8   :  { %1951 = vmatmul.msk.f32.vlgmr.msrb.gmra.mxu3 %vm202_vm12, %v2582_v56 }
 0xbd9   :  { %1962 = vmatpush.xpose.msk.msra.mxu0 %vm202_vm12, %v1296_v59 }
 0xbdc   :  { %v1164_v12 = vpop.permute.xlu1 %1163  ;;  %v1194_v62 = vpop.permute.xlu0 %1193 }
 0xbdd   :  { %1957 = vmatmul.msk.f32.vlgmr.msrb.gmra.mxu0 %vm202_vm12, %v1164_v12  ;;  %1958 = vmatpush.xpose.msk.msrb.mxu1 %vm202_vm12, %v1194_v62  ;;  %v1424_v5 = vpop.permute.xlu2 %1423 }
 0xbe1   :  { %1964 = vmatpush.xpose.msk.msra.mxu1 %vm202_vm12, %v1324_v1 }
 0xbe4   :  { %v1192_v24 = vpop.permute.xlu1 %1191  ;;  %v1294_v2 = vpop.permute.xlu0 %1293 }
 0xbe5   :  { %1959 = vmatmul.msk.f32.vlgmr.msrb.gmra.mxu1 %vm202_vm12, %v1192_v24  ;;  %1963 = vmatmul.msk.f32.vlgmr.msra.gmra.mxu0 %vm202_vm12, %v1294_v2 }
 0xbec   :  { %v1426_v3 = vpop.permute.xlu1 %1425  ;;  %v1322_v4 = vpop.permute.xlu0 %1321 }
 0xbed   :  { %1965 = vmatmul.msk.f32.vlgmr.msra.gmra.mxu1 %vm202_vm12, %v1322_v4  ;;  %1968 = vmatpush.xpose.msk.msrb.mxu0 %vm202_vm12, %v1426_v3 }
 0xbf0   :  { %1969 = vmatmul.msk.f32.vlgmr.msrb.gmra.mxu0 %vm202_vm12, %v1424_v5 }
 0xbf4   :  { %v1454_v6 = vpop.permute.xlu1 %1453  ;;  %v1452_v8 = vpop.permute.xlu0 %1451 }
 0xbf5   :  { %1970 = vmatpush.xpose.msk.msrb.mxu1 %vm202_vm12, %v1454_v6 }
 0xbf8   :  { %1971 = vmatmul.msk.f32.vlgmr.msrb.gmra.mxu1 %vm202_vm12, %v1452_v8 }
 0xc46   :  { %v1086_v9 = vpop.f32.mrf.mxu0 }
 0xc47   :  { %v1092_v10 = vsel %vm202_vm12, %v1086_v9, -inf }
 0xc48   :  { %1093 = vmax.xlane.f32.xlu1 %v1092_v10 }
 0xc5a   :  { %v1188_v42 = vpop.f32.mrf.mxu0 }
 0xc5b   :  { %v1059_v43 = vpop.f32.mrf.mxu3  ;;  %v1219_v46 = vsel %vm202_vm12, %v1188_v42, -inf }
 0xc5c   :  { %1220 = vmax.xlane.f32.xlu0 %v1219_v46  ;;  %v1089_v11 = vsel %vm202_vm12, %v1059_v43, -inf }
 0xc5d   :  { %1090 = vmax.xlane.f32.xlu2 %v1089_v11 }
 0xc62   :  { %v1216_v13 = vpop.f32.mrf.mxu1  ;;  %v1318_v14 = vpop.f32.mrf.mxu0 }
 0xc63   :  { %v1349_v15 = vsel %vm202_vm12, %v1318_v14, -inf  ;;  %v1222_v16 = vsel %vm202_vm12, %v1216_v13, -inf }
 0xc64   :  { %1350 = vmax.xlane.f32.xlu1 %v1349_v15 }
 0xc65   :  { %1223 = vmax.xlane.f32.xlu2 %v1222_v16 }
 0xc6a   :  { %v1346_v20 = vpop.f32.mrf.mxu1 }
 0xc6b   :  { %v1352_v21 = vsel %vm202_vm12, %v1346_v20, -inf }
 0xc6d   :  { %v1448_v22 = vpop.f32.mrf.mxu0  ;;  %1353 = vmax.xlane.f32.xlu2 %v1352_v21 }
 0xc6e   :  { %v1479_v23 = vsel %vm202_vm12, %v1448_v22, -inf }
 0xc6f   :  { %1480 = vmax.xlane.f32.xlu0 %v1479_v23 }
 0xc75   :  { %v2639_v25 = vpop.f32.mrf.mxu1 }
 0xc76   :  { %v1482_v26 = vsel %vm202_vm12, %v2639_v25, -inf }
 0xc77   :  { %1483 = vmax.xlane.f32.xlu1 %v1482_v26 }
 0xc85   :  { %2047 = vrot.lane.b32.xlu2 %v2046_v27, %s2208_s19 }
 0xcbb   :  { %v1094_v28 = vpop.xlane.xlu1 %1093 }
 0xcbc   :  { %v1096_v29 = vsub.f32 %v1086_v9, %v1094_v28 }
 0xcbe   :  { %v1099_v30 = vmul.f32 1.442695, %v1096_v29 }
 0xcc0   :  { %2125 = vpow2.f32 %v1099_v30 }
 0xcc6   :  { %v2646_v32 = vpop.eup %2125 }
 0xcc7   :  { %v1104_v33 = vsel %vm202_vm12, %v2646_v32, 0.0 }
 0xcc8   :  { %1105 = vadd.xlane.f32.xlu0 %v1104_v33 }
 0xccf   :  { %v1221_v34 = vpop.xlane.xlu0 %1220 }
 0xcd0   :  { %v1225_v35 = vsub.f32 %v1188_v42, %v1221_v34  ;;  %v1091_v36 = vpop.xlane.xlu2 %1090 }
 0xcd1   :  { %v1095_v37 = vsub.f32 %v1059_v43, %v1091_v36 }
 0xcd2   :  { %v1227_v38 = vmul.f32 1.442695, %v1225_v35 }
 0xcd3   :  { %v1097_v39 = vmul.f32 1.442695, %v1095_v37 }
 0xcd4   :  { %2127 = vpow2.f32 %v1227_v38 }
 0xcd5   :  { %2129 = vpow2.f32 %v1097_v39 }
 0xcd7   :  { %v1351_v53 = vpop.xlane.xlu1 %1350 }
 0xcd8   :  { %v1224_v40 = vpop.xlane.xlu2 %1223  ;;  %v1355_v7 = vsub.f32 %v1318_v14, %v1351_v53 }
 0xcd9   :  { %v1226_v41 = vsub.f32 %v1216_v13, %v1224_v40 }
 0xcda   :  { %v2650_v48 = vpop.eup %2127  ;;  %v1357_v61 = vmul.f32 1.442695, %v1355_v7 }
 0xcdb   :  { %v2130_v0 = vpop.eup %2129  ;;  %v1229_v50 = vmul.f32 1.442695, %v1226_v41  ;;  %v1231_v51 = vsel %vm202_vm12, %v2650_v48, 0.0 }
 0xcdc   :  { %1232 = vadd.xlane.f32.xlu1 %v1231_v51  ;;  %v1101_v52 = vsel %vm202_vm12, %v2130_v0, 0.0 }
 0xcdd   :  { %2131 = vpow2.f32 %v1229_v50  ;;  %1102 = vadd.xlane.f32.xlu2 %v1101_v52 }
 0xce0   :  { %v1354_v63 = vpop.xlane.xlu2 %1353 }
 0xce1   :  { %v1356_v55 = vsub.f32 %v1346_v20, %v1354_v63 }
 0xce2   :  { %v1481_v12 = vpop.xlane.xlu0 %1480 }
 0xce3   :  { %v2655_v57 = vpop.eup %2131  ;;  %v1359_v59 = vmul.f32 1.442695, %v1356_v55  ;;  %v1485_v3 = vsub.f32 %v1448_v22, %v1481_v12 }
 0xce4   :  { %v1234_v60 = vsel %vm202_vm12, %v2655_v57, 0.0 }
 0xce5   :  { %2133 = vpow2.f32 %v1359_v59  ;;  %1235 = vadd.xlane.f32.xlu0 %v1234_v60  ;;  %v1487_v5 = vmul.f32 1.442695, %v1485_v3 }
 0xce6   :  { %2135 = vpow2.f32 %v1357_v61 }
 0xce7   :  { %2137 = vpow2.f32 %v1487_v5 }
 0xce8   :  { %v2048_v62 = vpop.permute.xlu2 %2047 }
 0xce9   :  { %v2050_v1 = vunpack.i.h.bf16 %v2048_v62  ;;  %v2049_v24 = vunpack.i.l.bf16 %v2048_v62 }
 0xcea   :  { %v1484_v42 = vpop.xlane.xlu1 %1483 }
 0xceb   :  { %v2659_v2 = vpop.eup %2133  ;;  %1132 = vmatpush.msra.mxu2 %v2049_v24  ;;  %1158 = vmatpush.msra.mxu3 %v2050_v1  ;;  %v1486_v43 = vsub.f32 %v2639_v25, %v1484_v42 }
 0xcec   :  { %v1364_v4 = vsel %vm202_vm12, %v2659_v2, 0.0  ;;  %v2136_v6 = vpop.eup %2135 }
 0xced   :  { %1365 = vadd.xlane.f32.xlu1 %v1364_v4  ;;  %v1361_v8 = vsel %vm202_vm12, %v2136_v6, 0.0  ;;  %v2138_v9 = vpop.eup %2137  ;;  %v1489_v46 = vmul.f32 1.442695, %v1486_v43 }
 0xcee   :  { %v1491_v10 = vsel %vm202_vm12, %v2138_v9, 0.0 }
 0xcef   :  { %2139 = vpow2.f32 %v1489_v46  ;;  %v2710_v46 = vld [vmem:[%s2796_s9 + $0x8] sm:$0xff] }
 0xcf5   :  { %2057 = vrot.lane.b32.xlu2 %v2046_v27, %s2211_s0  ;;  %1362 = vadd.xlane.f32.xlu1 %v1361_v8 }
 0xcf9   :  { %2052 = vrot.lane.b32.xlu0 %v2046_v27, %s2210_s21 }
 0xcfd   :  { %1527 = vrot.lane.b32.xlu2 %v2588_v58, %s2212_s22  ;;  %1492 = vadd.xlane.f32.xlu1 %v1491_v10  ;;  %v2140_v58 = vpop.eup %2139 }
 0xcfe   :  { %v1494_v11 = vsel %vm202_vm12, %v2140_v58, 0.0 }
 0xd05   :  { %2062 = vrot.lane.b32.xlu2 %v2061_v18, %s2213_s1 }
 0xd16   :  { %1501 = vrot.lane.b32.xlu1 %v2582_v56, %s2212_s22 }
 0xd1e   :  { %2067 = vrot.lane.b32.xlu1 %v2066_v19, %s2213_s1 }
 0xd23   :  { %1495 = vadd.xlane.f32.xlu0 %v1494_v11 }
 0xd3b   :  { %v1106_v13 = vpop.xlane.xlu0 %1105 }
 0xd3c   :  { %2141 = vrcp.f32 %v1106_v13 }
 0xd42   :  { %v2142_v44 = vpop.eup %2141 }
 0xd43   :  { %v1110_v45 = vmul.f32 %v2142_v44, %v2646_v32 }
 0xd45   :  { %1955 = vmatmul.msk.f32.vlgmr.msra.gmra.mxu3 %vm202_vm12, %v1110_v45 }
 0xd4f   :  { %v1233_v14 = vpop.xlane.xlu1 %1232 }
 0xd50   :  { %v1103_v18 = vpop.xlane.xlu2 %1102 }
 0xd51   :  { %2143 = vrcp.f32 %v1103_v18 }
 0xd52   :  { %2145 = vrcp.f32 %v1233_v14 }
 0xd57   :  { %v2144_v56 = vpop.eup %2143 }
 0xd58   :  { %v1109_v15 = vmul.f32 %v2144_v56, %v2130_v0  ;;  %v1236_v17 = vpop.xlane.xlu0 %1235  ;;  %v2058_v19 = vpop.permute.xlu2 %2057 }
 0xd59   :  { %2147 = vrcp.f32 %v1236_v17  ;;  %v2146_v16 = vpop.eup %2145  ;;  %v2060_v28 = vunpack.i.h.bf16 %v2058_v19  ;;  %v2059_v29 = vunpack.i.l.bf16 %v2058_v19 }
 0xd5a   :  { %1954 = vmatmul.msk.f32.vlgmr.msra.gmra.mxu2 %vm202_vm12, %v1109_v15  ;;  %v1239_v26 = vmul.f32 %v2146_v16, %v2650_v48 }
 0xd5f   :  { %v2148_v21 = vpop.eup %2147 }
 0xd60   :  { %v1366_v47 = vpop.xlane.xlu1 %1365  ;;  %v1240_v27 = vmul.f32 %v2148_v21, %v2655_v57  ;;  %v1528_v30 = vpop.permute.xlu2 %1527 }
 0xd61   :  { %2149 = vrcp.f32 %v1366_v47 }
 0xd67   :  { %v2150_v32 = vpop.eup %2149 }
 0xd68   :  { %v1363_v20 = vpop.xlane.xlu1 %1362  ;;  %v1370_v34 = vmul.f32 %v2150_v32, %v2659_v2  ;;  %v2063_v55 = vpop.permute.xlu2 %2062 }
 0xd69   :  { %2151 = vrcp.f32 %v1363_v20  ;;  %v2065_v57 = vunpack.i.h.bf16 %v2063_v55  ;;  %v2064_v7 = vunpack.i.l.bf16 %v2063_v55 }
 0xd6b   :  { %v2053_v22 = vpop.permute.xlu0 %2052  ;;  %1618 = vmatpush.msra.mxu0 %v2064_v7 }
 0xd6c   :  { %v2055_v23 = vunpack.i.h.bf16 %v2053_v22  ;;  %v2054_v25 = vunpack.i.l.bf16 %v2053_v22 }
 0xd6d   :  { %1619 = vmatpush.msra.mxu0 %v2065_v57 }
 0xd6e   :  { %1262 = vmatpush.msrb.mxu2 %v2054_v25  ;;  %1288 = vmatpush.msrb.mxu3 %v2055_v23  ;;  %v1835_v23 = vld [vmem:[#allocation2] sm:$0x1] }
 0xd6f   :  { %1960 = vmatmul.msk.f32.vlgmr.msrb.gmra.mxu2 %vm202_vm12, %v1239_v26  ;;  %1961 = vmatmul.msk.f32.vlgmr.msrb.gmra.mxu3 %vm202_vm12, %v1240_v27  ;;  %v2152_v33 = vpop.eup %2151  ;;  %v1979_v26 = vld [vmem:[%s2793_s6 + $0x38] sm:$0xff]  ;;  %v1978_v27 = vld [vmem:[%s2793_s6 + $0x30] sm:$0xff] }
 0xd70   :  { %1392 = vmatpush.msra.mxu2 %v2059_v29  ;;  %1418 = vmatpush.msra.mxu3 %v2060_v28  ;;  %v1369_v35 = vmul.f32 %v2152_v33, %v2136_v6  ;;  %v1493_v36 = vpop.xlane.xlu1 %1492  ;;  %v1977_v28 = vld [vmem:[%s2793_s6 + $0x28] sm:$0xff]  ;;  %v1976_v29 = vld [vmem:[%s2793_s6 + $0x20] sm:$0xff] }
 0xd71   :  { %2153 = vrcp.f32 %v1493_v36  ;;  %1709 = vmatpush.msra.mxu1 %v1979_v26 }
 0xd72   :  { %1548 = vmatpush.msrb.mxu3 %v1528_v30 }
 0xd73   :  { %1710 = vmatpush.msra.mxu1 %v1978_v27  ;;  %v1747_v27 = vperm.slane %v2710_v46, 3 }
 0xd75   :  { %1711 = vmatpush.msra.mxu1 %v1977_v28 }
 0xd77   :  { %1966 = vmatmul.msk.f32.vlgmr.msra.gmra.mxu2 %vm202_vm12, %v1369_v35  ;;  %1967 = vmatmul.msk.f32.vlgmr.msra.gmra.mxu3 %vm202_vm12, %v1370_v34  ;;  %v2154_v37 = vpop.eup %2153 }
 0xd78   :  { %v1499_v38 = vmul.f32 %v2154_v37, %v2138_v9  ;;  %1712 = vmatpush.msra.mxu1 %v1976_v29 }
 0xd88   :  { %v1502_v39 = vpop.permute.xlu1 %1501 }
 0xd89   :  { %1522 = vmatpush.msrb.mxu2 %v1502_v39 }
 0xd8a   :  { %1972 = vmatmul.msk.f32.vlgmr.msrb.gmra.mxu2 %vm202_vm12, %v1499_v38 }
 0xd90   :  { %v2068_v61 = vpop.permute.xlu1 %2067 }
 0xd91   :  { %v2070_v12 = vunpack.i.h.bf16 %v2068_v61  ;;  %v2069_v62 = vunpack.i.l.bf16 %v2068_v61 }
 0xd93   :  { %1620 = vmatpush.msra.mxu0 %v2069_v62 }
 0xd95   :  { %1621 = vmatpush.msra.mxu0 %v2070_v12 }
 0xd96   :  { %v1496_v40 = vpop.xlane.xlu0 %1495 }
 0xd97   :  { %2155 = vrcp.f32 %v1496_v40  ;;  %v1675_v40 = vperm.slane %v2710_v46, 1 }
 0xd9d   :  { %v2156_v41 = vpop.eup %2155 }
 0xd9e   :  { %v1500_v48 = vmul.f32 %v2156_v41, %v2140_v58  ;;  %v1583_v58 = vperm.slane %v2710_v46, 0 }
 0xda0   :  { %1973 = vmatmul.msk.f32.vlgmr.msrb.gmra.mxu3 %vm202_vm12, %v1500_v48 }
 0xdc8   :  { %v1160_v0 = vpop.f32.mrf.mxu3 }
 0xddd   :  { %v1134_v50 = vpop.f32.mrf.mxu2 }
 0xdf2   :  { %v1264_v51 = vpop.f32.mrf.mxu2  ;;  %v1290_v52 = vpop.f32.mrf.mxu3 }
 0xdf3   :  { %1555 = vrot.lane.b32.xlu2 %v1264_v51, %s2214_s2  ;;  %v1678_v51 = vperm.slane %v2710_v46, 2 }
 0xdfa   :  { %v1394_v53 = vpop.f32.mrf.mxu2  ;;  %v1420_v63 = vpop.f32.mrf.mxu3 }
 0xdfb   :  { %1565 = vrot.lane.b32.xlu0 %v1420_v63, %s2804_s5  ;;  %1563 = vrot.lane.b32.xlu2 %v1394_v53, %s2804_s5 }
 0xe03   :  { %1557 = vrot.lane.b32.xlu2 %v1290_v52, %s2214_s2 }
 0xe0d   :  { %v1524_v59 = vpop.f32.mrf.mxu2 }
 0xe0e   :  { %1571 = vrot.lane.b32.xlu1 %v1524_v59, %s2805_s13 }
 0xe23   :  { %v1550_v60 = vpop.f32.mrf.mxu3 }
 0xe24   :  { %1573 = vrot.lane.b32.xlu1 %v1550_v60, %s2805_s13 }
 0xe4d   :  { %v1556_v1 = vpop.permute.xlu2 %1555 }
 0xe4e   :  { %v1577_v2 = vsel %vm202_vm12, %v1134_v50, %v1556_v1 }
 0xe55   :  { %v1564_v24 = vpop.permute.xlu2 %1563 }
 0xe56   :  { %v1579_v3 = vsel %vm744_vm13, %v1577_v2, %v1564_v24  ;;  %v1990_v2 = vld [vmem:[%s2795_s8 + $0x78] sm:$0xff] }
 0xe57   :  { %1762 = vmatpush.msra.mxu2 %v1990_v2 }
 0xe5d   :  { %v1558_v6 = vpop.permute.xlu2 %1557 }
 0xe5e   :  { %v1578_v9 = vsel %vm202_vm12, %v1160_v0, %v1558_v6  ;;  %v1986_v6 = vld [vmem:[%s2795_s8 + $0x58] sm:$0xff] }
 0xe6d   :  { %v1566_v8 = vpop.permute.xlu0 %1565 }
 0xe6e   :  { %v1580_v10 = vsel %vm744_vm13, %v1578_v9, %v1566_v8  ;;  %v1985_v8 = vld [vmem:[%s2795_s8 + $0x50] sm:$0xff]  ;;  %v1984_v9 = vld [vmem:[%s2795_s8 + $0x48] sm:$0xff] }
 0xe80   :  { %v1572_v4 = vpop.permute.xlu1 %1571 }
 0xe81   :  { %v1581_v5 = vsel %vm747_vm14, %v1579_v3, %v1572_v4  ;;  %v1989_v3 = vld [vmem:[%s2795_s8 + $0x70] sm:$0xff]  ;;  %v1988_v4 = vld [vmem:[%s2795_s8 + $0x68] sm:$0xff] }
 0xe82   :  { %1974 = vmatmul.msk.f32.vlgmr.msra.gmra.mxu0 %vm103_vm4, %v1581_v5  ;;  %1763 = vmatpush.msra.mxu2 %v1989_v3  ;;  %v1987_v5 = vld [vmem:[%s2795_s8 + $0x60] sm:$0xff] }
 0xe84   :  { %1764 = vmatpush.msra.mxu2 %v1988_v4 }
 0xe86   :  { %1765 = vmatpush.msra.mxu2 %v1987_v5 }
 0xe88   :  { %1766 = vmatpush.msra.mxu2 %v1986_v6 }
 0xe8a   :  { %1767 = vmatpush.msra.mxu2 %v1985_v8 }
 0xe8c   :  { %1768 = vmatpush.msra.mxu2 %v1984_v9 }
 0xe96   :  { %v1574_v42 = vpop.permute.xlu1 %1573 }
 0xe97   :  { %v1582_v43 = vsel %vm747_vm14, %v1580_v10, %v1574_v42  ;;  %v1983_v10 = vld [vmem:[%s2795_s8 + $0x40] sm:$0xff] }
 0xe98   :  { %1975 = vmatmul.msk.f32.gmra.mxu0 %vm103_vm4, %v1582_v43  ;;  %1769 = vmatpush.msra.mxu2 %v1983_v10  ;;  %v2074_v42 = vld [vmem:[%s2794_s7 + $0x1] ss:$0 sm:$0xff] }
 0xeff   :  { %v1623_v11 = vpop.f32.mrf.mxu0 }
 0xf00   :  { %v1624_v13 = vadd.f32 %v1623_v11, %v1583_v58 }
 0xf02   :  { %v1629_v44 = vadd.f32 %v1624_v13, %v2571_v49 }
 0xf04   :  { %v1631_v45 = vsel %vm103_vm4, %v1629_v44, 0.0 }
 0xf05   :  { %1632 = vadd.xlane.f32.xlu2 %v1631_v45 }
 0xf15   :  { %v1626_v18 = vpop.f32.mrf.mxu0 }
 0xf16   :  { %v1627_v56 = vadd.f32 %v1626_v18, %v1583_v58 }
 0xf18   :  { %v1630_v14 = vadd.f32 %v1627_v56, %v2575_v54 }
 0xf1a   :  { %v1634_v15 = vsel %vm103_vm4, %v1630_v14, 0.0 }
 0xf1b   :  { %1635 = vadd.xlane.f32.xlu1 %v1634_v15 }
 0xf78   :  { %v1633_v47 = vpop.xlane.xlu2 %1632 }
 0xf79   :  { %v1637_v17 = vmul.f32 %v1633_v47, %v2318_v31 }
 0xf7b   :  { %v1639_v19 = vsub.f32 %v1629_v44, %v1637_v17 }
 0xf7d   :  { %v1641_v16 = vmul.f32 %v1639_v19, %v1639_v19 }
 0xf7f   :  { %v1643_v20 = vsel %vm103_vm4, %v1641_v16, 0.0 }
 0xf80   :  { %1644 = vadd.xlane.f32.xlu0 %v1643_v20 }
 0xf8e   :  { %v1636_v21 = vpop.xlane.xlu1 %1635 }
 0xf8f   :  { %v1638_v49 = vmul.f32 %v1636_v21, %v2318_v31 }
 0xf91   :  { %v1640_v22 = vsub.f32 %v1630_v14, %v1638_v49 }
 0xf93   :  { %v1642_v25 = vmul.f32 %v1640_v22, %v1640_v22 }
 0xf94   :  { %1838 = vperm.xlu0 %2015, %v1835_v23  }
 0xf95   :  { %v1646_v54 = vsel %vm103_vm4, %v1642_v25, 0.0 }
 0xf96   :  { %1647 = vadd.xlane.f32.xlu2 %v1646_v54 }
 0xff3   :  { %v1645_v30 = vpop.xlane.xlu0 %1644 }
 0xff4   :  { %v1649_v32 = vmul.f32 %v1645_v30, %v2318_v31 }
 0xff6   :  { %v1651_v33 = vadd.f32 1e-12, %v1649_v32 }
 0xff8   :  { %2157 = vrsqrt.f32 %v1651_v33  ;;  %vm1659_vm13 = vweird.f32 %v1651_v33 }
 0xffe   :  { %v2158_v34 = vpop.eup %2157 }
 0xfff   :  { %v1654_v35 = vmul.f32 %v2158_v34, %v1651_v33  ;;  %vm1660_vm12 = vweird.f32 %v2158_v34 }
0x1000   :  { %vm1661_vm14 = vmor %vm1659_vm13, %vm1660_vm12  ;;  %vm1887_vm12 = vcmask 8192  }
0x1001   :  { %v1655_v36 = vmul.f32 %v2158_v34, %v1654_v35 }
0x1003   :  { %v1656_v37 = vmul.f32 0.5, %v1655_v36 }
0x1005   :  { %v1657_v38 = vsub.f32 1.5, %v1656_v37 }
0x1007   :  { %v1658_v39 = vmul.f32 %v2158_v34, %v1657_v38 }
0x1009   :  { %v1662_v41 = vsel %vm1661_vm14, %v2158_v34, %v1658_v39  ;;  %v1648_v48 = vpop.xlane.xlu2 %1647 }
0x100a   :  { %v1673_v0 = vmul.f32 %v1662_v41, %v1639_v19  ;;  %v1650_v50 = vmul.f32 %v1648_v48, %v2318_v31 }
0x100c   :  { %v1676_v52 = vmul.f32 %v1675_v40, %v1673_v0  ;;  %v1652_v53 = vadd.f32 1e-12, %v1650_v50 }
0x100e   :  { %2159 = vrsqrt.f32 %v1652_v53  ;;  %v1679_v63 = vadd.f32 %v1678_v51, %v1676_v52  ;;  %vm1669_vm1 = vweird.f32 %v1652_v53 }
0x1010   :  { %1981 = vmatmul.msk.f32.vlgmr.msra.gmra.mxu1 %vm103_vm4, %v1679_v63 }
0x1014   :  { %v2160_v55 = vpop.eup %2159 }
0x1015   :  { %v1664_v57 = vmul.f32 %v2160_v55, %v1652_v53  ;;  %vm1670_vm0 = vweird.f32 %v2160_v55 }
0x1016   :  { %vm1671_vm2 = vmor %vm1669_vm1, %vm1670_vm0 }
0x1017   :  { %v1665_v7 = vmul.f32 %v2160_v55, %v1664_v57 }
0x1019   :  { %v1666_v59 = vmul.f32 0.5, %v1665_v7 }
0x101b   :  { %v1667_v60 = vsub.f32 1.5, %v1666_v59 }
0x101d   :  { %v1668_v61 = vmul.f32 %v2160_v55, %v1667_v60 }
0x101f   :  { %v1672_v12 = vsel %vm1671_vm2, %v2160_v55, %v1668_v61 }
0x1020   :  { %v1674_v62 = vmul.f32 %v1672_v12, %v1640_v22 }
0x1022   :  { %v1677_v1 = vmul.f32 %v1675_v40, %v1674_v62 }
0x1024   :  { %v1680_v24 = vadd.f32 %v1678_v51, %v1677_v1 }
0x1026   :  { %1982 = vmatmul.msk.f32.gmra.mxu1 %vm103_vm4, %v1680_v24 }
0x108d   :  { %v1714_v43 = vpop.f32.mrf.mxu1 }
0x108e   :  { %v1715_v58 = vadd.f32 %v2074_v42, %v1714_v43 }
0x1090   :  { %v1722_v11 = vmul.f32 0.044715, %v1715_v58  ;;  %v1720_v14 = vmul.f32 0.5, %v1715_v58 }
0x1092   :  { %v1724_v13 = vmul.f32 %v1722_v11, %v1715_v58 }
0x1094   :  { %v1726_v44 = vmul.f32 %v1724_v13, %v1715_v58  ;;  %v1826_v13 = vperm.slane %v2710_v46, 5 }
0x1096   :  { %v1728_v45 = vadd.f32 %v1726_v44, %v1715_v58 }
0x1098   :  { %v1730_v18 = vmul.f32 0.7978846, %v1728_v45 }
0x109a   :  { %2161 = vtanh.f32 %v1730_v18 }
0x10a0   :  { %v2162_v56 = vpop.eup %2161 }
0x10a1   :  { %v1734_v15 = vadd.f32 1.0, %v2162_v56 }
0x10a3   :  { %v1717_v47 = vpop.f32.mrf.mxu1  ;;  %v1736_v17 = vmul.f32 %v1734_v15, %v1720_v14  ;;  %v1834_v14 = vld [vmem:[%s2797_s10] sm:$0x1]  ;;  %v1839_v15 = vpop.permute.xlu0 %1838  ;;  %s1894_s10 = sshll.u32 %s2217_s15, 4  ;;  %s1895_s10 = int_to_ptr.vmem [resolvable:$true] %s1894_s10 }
0x10a4   :  { %v1718_v19 = vadd.f32 %v2074_v42, %v1717_v47  ;;  %v1841_v47 = vperm.slane %v1839_v15, 0 }
0x10a5   :  { %1991 = vmatmul.msk.f32.vlgmr.msra.gmra.mxu2 %vm912_vm6, %v1736_v17 }
0x10a6   :  { %v1723_v16 = vmul.f32 0.044715, %v1718_v19  ;;  %v1721_v25 = vmul.f32 0.5, %v1718_v19 }
0x10a8   :  { %v1725_v20 = vmul.f32 %v1723_v16, %v1718_v19 }
0x10aa   :  { %v1727_v21 = vmul.f32 %v1725_v20, %v1718_v19 }
0x10ac   :  { %v1729_v49 = vadd.f32 %v1727_v21, %v1718_v19 }
0x10ae   :  { %v1731_v22 = vmul.f32 0.7978846, %v1729_v49 }
0x10b0   :  { %2163 = vtanh.f32 %v1731_v22 }
0x10b6   :  { %v2164_v23 = vpop.eup %2163 }
0x10b7   :  { %v1735_v54 = vadd.f32 1.0, %v2164_v23 }
0x10b9   :  { %v1737_v26 = vmul.f32 %v1735_v54, %v1721_v25 }
0x10bb   :  { %1992 = vmatmul.msk.f32.gmra.mxu2 %vm912_vm6, %v1737_v26 }
0x1128   :  { %v1771_v28 = vpop.f32.mrf.mxu2 }
0x1129   :  { %v1772_v29 = vadd.f32 %v1771_v28, %v1747_v27 }
0x112b   :  { %v1777_v30 = vadd.f32 %v1772_v29, %v1679_v63 }
0x112d   :  { %v1779_v32 = vsel %vm103_vm4, %v1777_v30, 0.0 }
0x112e   :  { %1780 = vadd.xlane.f32.xlu2 %v1779_v32 }
0x113e   :  { %v1774_v33 = vpop.f32.mrf.mxu2 }
0x113f   :  { %v1775_v34 = vadd.f32 %v1774_v33, %v1747_v27 }
0x1141   :  { %v1778_v35 = vadd.f32 %v1775_v34, %v1680_v24 }
0x1143   :  { %v1782_v36 = vsel %vm103_vm4, %v1778_v35, 0.0 }
0x1144   :  { %1783 = vadd.xlane.f32.xlu1 %v1782_v36 }
0x11a1   :  { %v1781_v37 = vpop.xlane.xlu2 %1780 }
0x11a2   :  { %v1785_v38 = vmul.f32 %v1781_v37, %v2318_v31 }
0x11a4   :  { %v1787_v39 = vsub.f32 %v1777_v30, %v1785_v38 }
0x11a6   :  { %v1789_v40 = vmul.f32 %v1787_v39, %v1787_v39 }
0x11a8   :  { %v1791_v41 = vsel %vm103_vm4, %v1789_v40, 0.0 }
0x11a9   :  { %1792 = vadd.xlane.f32.xlu2 %v1791_v41 }
0x11b7   :  { %v1784_v48 = vpop.xlane.xlu1 %1783 }
0x11b8   :  { %v1786_v0 = vmul.f32 %v1784_v48, %v2318_v31 }
0x11ba   :  { %v1788_v50 = vsub.f32 %v1778_v35, %v1786_v0 }
0x11bc   :  { %v1790_v51 = vmul.f32 %v1788_v50, %v1788_v50 }
0x11be   :  { %v1794_v52 = vsel %vm103_vm4, %v1790_v51, 0.0 }
0x11bf   :  { %1795 = vadd.xlane.f32.xlu1 %v1794_v52 }
0x121c   :  { %v1793_v53 = vpop.xlane.xlu2 %1792 }
0x121d   :  { %v1797_v63 = vmul.f32 %v1793_v53, %v2318_v31 }
0x121f   :  { %v1799_v55 = vadd.f32 1e-12, %v1797_v63 }
0x1221   :  { %2165 = vrsqrt.f32 %v1799_v55  ;;  %vm1807_vm5 = vweird.f32 %v1799_v55 }
0x1227   :  { %v2166_v57 = vpop.eup %2165 }
0x1228   :  { %v1802_v7 = vmul.f32 %v2166_v57, %v1799_v55  ;;  %vm1808_vm3 = vweird.f32 %v2166_v57 }
0x1229   :  { %vm1809_vm6 = vmor %vm1807_vm5, %vm1808_vm3 }
0x122a   :  { %v1803_v61 = vmul.f32 %v2166_v57, %v1802_v7 }
0x122c   :  { %v1804_v62 = vmul.f32 0.5, %v1803_v61 }
0x122e   :  { %v1805_v1 = vsub.f32 1.5, %v1804_v62 }
0x1230   :  { %v1806_v3 = vmul.f32 %v2166_v57, %v1805_v1 }
0x1232   :  { %v1796_v59 = vpop.xlane.xlu1 %1795  ;;  %v1810_v6 = vsel %vm1809_vm6, %v2166_v57, %v1806_v3 }
0x1233   :  { %v1798_v60 = vmul.f32 %v1796_v59, %v2318_v31  ;;  %v1823_v31 = vperm.slane %v2710_v46, 4  ;;  %v1821_v10 = vmul.f32 %v1810_v6, %v1787_v39 }
0x1235   :  { %v1800_v12 = vadd.f32 1e-12, %v1798_v60  ;;  %v1824_v58 = vmul.f32 %v1823_v31, %v1821_v10 }
0x1237   :  { %2167 = vrsqrt.f32 %v1800_v12  ;;  %vm1817_vm8 = vweird.f32 %v1800_v12  ;;  %v1827_v45 = vadd.f32 %v1826_v13, %v1824_v58 }
0x123d   :  { %v2168_v24 = vpop.eup %2167 }
0x123e   :  { %v1812_v2 = vmul.f32 %v2168_v24, %v1800_v12  ;;  %vm1818_vm7 = vweird.f32 %v2168_v24 }
0x123f   :  { %vm1819_vm9 = vmor %vm1817_vm8, %vm1818_vm7 }
0x1240   :  { %v1813_v4 = vmul.f32 %v2168_v24, %v1812_v2 }
0x1242   :  { %v1814_v5 = vmul.f32 0.5, %v1813_v4 }
0x1244   :  { %v1815_v8 = vsub.f32 1.5, %v1814_v5 }
0x1246   :  { %v1816_v9 = vmul.f32 %v2168_v24, %v1815_v8 }
0x1248   :  { %v1820_v42 = vsel %vm1819_vm9, %v2168_v24, %v1816_v9 }
0x1249   :  { %v1822_v43 = vmul.f32 %v1820_v42, %v1788_v50 }
0x124b   :  { %v1825_v11 = vmul.f32 %v1823_v31, %v1822_v43 }
0x124d   :  { %v1828_v44 = vadd.f32 %v1826_v13, %v1825_v11 }
0x124f   :  { %v1830_v18 = vrot.slane %v1828_v44, 7 }
0x1251   :  { %v1833_v56 = vsel %vm1832_vm10, %v1827_v45, %v1830_v18 }
0x1252   :  { %1993 = vmatpush.xpose.msk.msra.mxu3 %vm103_vm4, %v1833_v56 }
0x1255   :  { %1994 = vmatmul.msk.f32.vlgmr.msra.gmra.mxu3 %vm103_vm4, %v1834_v14 }
0x12d8   :  { %v1865_v17 = vpop.f32.mrf.mxu3 }
0x12d9   :  { %v1866_v19 = vadd.f32 %v1865_v17, %v1841_v47 }
0x12db   :  { %v1995_v16 = vmul.f32 -1.442695, %v1866_v19 }
0x12dd   :  { %2169 = vpow2.f32 %v1995_v16 }
0x12e3   :  { %v2170_v46 = vpop.eup %2169 }
0x12e4   :  { %v1871_v20 = vadd.f32 1.0, %v2170_v46 }
0x12e6   :  { %2171 = vrcp.f32 %v1871_v20  ;;  %v1883_v23 = vand.u32 2147483648, %v1871_v20  ;;  %v1881_v54 = vand.u32 2147483647, %v1871_v20  ;;  %vm1877_vm4 = vweird.f32 %v1871_v20 }
0x12e8   :  { %v1884_v27 = vor.u32 1.1754944e-38, %v1883_v23  ;;  %vm1882_vm13 = vcmp.eq.f32.partialorder %v1881_v54, 8.507059e+37 }
0x12ec   :  { %v2172_v21 = vpop.eup %2171 }
0x12ed   :  { %v1873_v49 = vmul.f32 %v2172_v21, %v1871_v20  ;;  %vm1878_vm11 = vweird.f32 %v2172_v21 }
0x12ee   :  { %vm1879_vm15 = vmor %vm1877_vm4, %vm1878_vm11 }
0x12ef   :  { %v1874_v22 = vsub.f32 1.0, %v1873_v49 }
0x12f1   :  { %v1875_v25 = vmul.f32 %v2172_v21, %v1874_v22 }
0x12f3   :  { %v1876_v26 = vadd.f32 %v2172_v21, %v1875_v25 }
0x12f5   :  { %v1880_v28 = vsel %vm1879_vm15, %v2172_v21, %v1876_v26 }
0x12f6   :  { %v1885_v29 = vsel %vm1882_vm13, %v1884_v27, %v1880_v28 }
0x12f7   :  { %1888 = vst.msk [vmem:[#allocation3] sm:$0x1] %vm1887_vm12, %v1885_v29 }
0x12f8   :  { %1899 = dma.vmem_to_hbm [thread:$0]  %s1895_s10, 16, %s1897_s17, [#allocation4]  }
0x12f9   :  { %2197 = dma.done.wait [#allocation4], 16  }
0x12fa   :  { %2198 = vsyncadd [#allocation4], 4294967280 }
0x12fb   :  { %1904 = vsyncpa [#allocation4], 1 }

</bundles_post_ra>
